<compile_context>
chip_gen: v7x
topology: tpu7x:2x2x1
jax: 0.10.0
libtpu: 0.0.40
codegen_flags: <defaults>
</compile_context>

<pallas_src>
import functools

import jax
import jax.numpy as jnp
from jax.experimental import pallas as pl
from jax.experimental.pallas import tpu as pltpu

_LN_EPS = 1e-5


def _round_up(x, m):
    return ((x + m - 1) // m) * m


def _choose_tm(m_pad, tile_m):
    """Largest row tile (multiple of 8, <= tile_m) dividing m_pad, preferring >=2 steps."""
    hi = max(8, min(tile_m, m_pad))
    hi -= hi % 8
    for cand in range(hi, 7, -8):
        if m_pad % cand == 0 and m_pad // cand >= 2:
            return cand
    for cand in range(hi, 7, -8):
        if m_pad % cand == 0:
            return cand
    return 8


def _vmem_limit_bytes():
    cap = 128 * 1024 * 1024
    try:
        cap = int(pltpu.get_tpu_info().vmem_capacity_bytes)
    except Exception:
        pass
    # ~75% of physical VMEM: ~96 MiB on v5e/v6e (128 MiB), 48 MiB on v7x (64 MiB).
    return max(32 * 1024 * 1024, min(cap * 3 // 4, 100 * 1024 * 1024))


def _layernorm_f32(x, g, b):
    """LayerNorm over last axis (torch semantics: biased variance, eps inside sqrt)."""
    mu = jnp.mean(x, axis=-1, keepdims=True)
    xc = x - mu
    var = jnp.mean(xc * xc, axis=-1, keepdims=True)
    return xc * jax.lax.rsqrt(var + _LN_EPS) * g + b


# --------------------------------------------------------------------------
# Kernels
# --------------------------------------------------------------------------
def _ln_qkv_kernel(x_ref, g_ref, b_ref, wqkv_ref, o_ref):
    """LN1 + QKV projection for one tile of rows.

    x: (tm, D) f32, g/b: (1, D) f32, wqkv: (D, 3D) bf16 (Q cols pre-scaled), o: (tm, 3D) bf16.
    """
    ln = _layernorm_f32(x_ref[...], g_ref[...], b_ref[...])
    qkv = jnp.dot(ln.astype(jnp.bfloat16), wqkv_ref[...],
                  preferred_element_type=jnp.float32)
    o_ref[...] = qkv.astype(o_ref.dtype)


def _attn_proj_res_kernel(qkv_ref, z_ref, wo_ref, bo_ref, o_ref, *, heads):
    """All-heads attention + output projection + bias + residual for one batch.

    qkv: (1, N, 3D) bf16 (Q pre-scaled by 1/sqrt(dh)), z: (1, N, D) f32,
    wo: (D, D) bf16, bo: (1, D) f32, o: (1, N, D) f32 (lane-dense).
    """
    n = qkv_ref.shape[1]
    d = qkv_ref.shape[2] // 3
    dh = d // heads
    qkv = qkv_ref[0]                              # (N, 3D) bf16
    acc = jnp.zeros((n, d), jnp.float32)          # lane-dense f32 accumulator
    for h in range(heads):                        # static unroll over heads
        q = qkv[:, h * dh:(h + 1) * dh]
        k = qkv[:, d + h * dh:d + (h + 1) * dh]
        v = qkv[:, 2 * d + h * dh:2 * d + (h + 1) * dh]
        s = jnp.dot(q, k.T, preferred_element_type=jnp.float32)        # (N, N)
        m = jnp.max(s, axis=-1, keepdims=True)
        p = jnp.exp(s - m)
        p = p * pl.reciprocal(jnp.sum(p, axis=-1, keepdims=True), approx=True)
        o_h = jnp.dot(p.astype(jnp.bfloat16), v,
                      preferred_element_type=jnp.float32)               # (N, dh)
        acc = acc + jnp.dot(o_h.astype(jnp.bfloat16),
                            wo_ref[h * dh:(h + 1) * dh, :],
                            preferred_element_type=jnp.float32)         # (N, D)
    o_ref[0] = (acc + bo_ref[...] + z_ref[0]).astype(o_ref.dtype)


def _ln_ffn_residual_kernel(x_ref, g_ref, b_ref, w1_ref, b1_ref,
                            w2_ref, b2_ref, o_ref):
    """LN2 + Linear + GELU + Linear + residual for one tile of rows.

    x: (tm, D) f32; w1: (D, H) bf16; w2: (H, D) bf16; biases / ln params f32.
    """
    x = x_ref[...]
    ln = _layernorm_f32(x, g_ref[...], b_ref[...])
    h = jnp.dot(ln.astype(jnp.bfloat16), w1_ref[...],
                preferred_element_type=jnp.float32) + b1_ref[...]
    # Exact (erf) GELU, matching torch.nn.GELU() default numerics.
    h = 0.5 * h * (1.0 + jax.lax.erf(h * jnp.float32(0.7071067811865476)))
    out = jnp.dot(h.astype(jnp.bfloat16), w2_ref[...],
                  preferred_element_type=jnp.float32) + b2_ref[...]
    o_ref[...] = (out + x).astype(o_ref.dtype)


# --------------------------------------------------------------------------
# Wrapper
# --------------------------------------------------------------------------
@functools.partial(jax.jit, static_argnames=("heads", "tile_m"))
def block_forward(z, params, *, heads, tile_m=256):
    """z: (B, N, D) f32.  Returns (B, N, D) f32."""
    B, N, D = z.shape
    H = params["w1"].shape[1]
    if D % heads != 0:
        raise ValueError(f"emb_dim={D} must be divisible by heads={heads}")
    dh = D // heads
    M = B * N
    M_pad = _round_up(M, 8)
    tm = _choose_tm(M_pad, tile_m)
    grid_m = M_pad // tm

    f32, bf16 = jnp.float32, jnp.bfloat16
    scale = 1.0 / float(dh) ** 0.5

    # Cast matmul weights to bf16 ONCE here; fold 1/sqrt(dh) into the Q columns of Wqkv.
    wqkv = params["wqkv"].astype(f32).at[:, :D].multiply(scale).astype(bf16)
    wo = params["wo"].astype(bf16)
    w1 = params["w1"].astype(bf16)
    w2 = params["w2"].astype(bf16)

    z_f32 = z.astype(f32)
    z2d = z_f32.reshape(M, D)
    if M_pad != M:
        z2d = jnp.pad(z2d, ((0, M_pad - M), (0, 0)))

    vmem_limit = _vmem_limit_bytes()
    row_cparams = pltpu.CompilerParams(
        dimension_semantics=("parallel",), vmem_limit_bytes=vmem_limit)

    # ---- 1) LN1 + fused QKV projection --------------------------------
    qkv_cost = pl.CostEstimate(
        flops=2 * M_pad * D * 3 * D,
        transcendentals=0,
        bytes_accessed=(M_pad * D * 4 + M_pad * 3 * D * 2
                        + D * 3 * D * 2 + 2 * D * 4))
    qkv2d = pl.pallas_call(
        _ln_qkv_kernel,
        out_shape=jax.ShapeDtypeStruct((M_pad, 3 * D), bf16),
        grid_spec=pltpu.PrefetchScalarGridSpec(
            num_scalar_prefetch=0,
            grid=(grid_m,),
            in_specs=[
                pl.BlockSpec((tm, D), lambda i: (i, 0)),       # x tile
                pl.BlockSpec((1, D), lambda i: (0, 0)),        # ln1 gamma
                pl.BlockSpec((1, D), lambda i: (0, 0)),        # ln1 beta
                pl.BlockSpec((D, 3 * D), lambda i: (0, 0)),    # Wqkv (resident)
            ],
            out_specs=pl.BlockSpec((tm, 3 * D), lambda i: (i, 0)),
        ),
        compiler_params=row_cparams,
        cost_estimate=qkv_cost,
    )(z2d, params["ln1_g"].astype(f32), params["ln1_b"].astype(f32), wqkv)

    # ---- 2) attention core + Wo + bias + residual, one batch per step ---
    qkv3 = qkv2d if M_pad == M else qkv2d[:M]
    qkv3 = qkv3.reshape(B, N, 3 * D)

    attn_cost = pl.CostEstimate(
        flops=4 * B * heads * N * N * dh + 2 * B * N * D * D,
        transcendentals=B * heads * N * N,
        bytes_accessed=(B * N * 3 * D * 2 + 2 * B * N * D * 4
                        + D * D * 2 + D * 4))
    attn_kernel = functools.partial(_attn_proj_res_kernel, heads=heads)
    out1 = pl.pallas_call(
        attn_kernel,
        out_shape=jax.ShapeDtypeStruct((B, N, D), f32),
        grid_spec=pltpu.PrefetchScalarGridSpec(
            num_scalar_prefetch=0,
            grid=(B,),
            in_specs=[
                pl.BlockSpec((1, N, 3 * D), lambda b: (b, 0, 0)),  # qkv (bf16)
                pl.BlockSpec((1, N, D), lambda b: (b, 0, 0)),      # residual z (f32)
                pl.BlockSpec((D, D), lambda b: (0, 0)),            # Wo (resident)
                pl.BlockSpec((1, D), lambda b: (0, 0)),            # bo
            ],
            out_specs=pl.BlockSpec((1, N, D), lambda b: (b, 0, 0)),
        ),
        compiler_params=pltpu.CompilerParams(
            dimension_semantics=("parallel",), vmem_limit_bytes=vmem_limit),
        cost_estimate=attn_cost,
    )(qkv3, z_f32, wo, params["bo"].astype(f32))

    # ---- 3) LN2 + FFN + residual ---------------------------------------
    out1_2d = out1.reshape(M, D)
    if M_pad != M:
        out1_2d = jnp.pad(out1_2d, ((0, M_pad - M), (0, 0)))

    ffn_cost = pl.CostEstimate(
        flops=4 * M_pad * D * H,
        transcendentals=M_pad * H,
        bytes_accessed=(2 * M_pad * D * 4 + 2 * D * H * 2 + (H + 3 * D) * 4))
    out2d = pl.pallas_call(
        _ln_ffn_residual_kernel,
        out_shape=jax.ShapeDtypeStruct((M_pad, D), f32),
        grid_spec=pltpu.PrefetchScalarGridSpec(
            num_scalar_prefetch=0,
            grid=(grid_m,),
            in_specs=[
                pl.BlockSpec((tm, D), lambda i: (i, 0)),    # post-attn residual
                pl.BlockSpec((1, D), lambda i: (0, 0)),     # ln2 gamma
                pl.BlockSpec((1, D), lambda i: (0, 0)),     # ln2 beta
                pl.BlockSpec((D, H), lambda i: (0, 0)),     # w1 (resident)
                pl.BlockSpec((1, H), lambda i: (0, 0)),     # b1
                pl.BlockSpec((H, D), lambda i: (0, 0)),     # w2 (resident)
                pl.BlockSpec((1, D), lambda i: (0, 0)),     # b2
            ],
            out_specs=pl.BlockSpec((tm, D), lambda i: (i, 0)),
        ),
        compiler_params=row_cparams,
        cost_estimate=ffn_cost,
    )(out1_2d, params["ln2_g"].astype(f32), params["ln2_b"].astype(f32),
      w1, params["b1"].astype(f32), w2, params["b2"].astype(f32))

    out = out2d if M_pad == M else out2d[:M]
    return out.reshape(B, N, D)


# --------------------------------------------------------------------------
# Parameter init (mimics torch defaults; weights stored as (in, out))
# --------------------------------------------------------------------------
def init_block_params(key, emb_dim, hidden_dim, dtype=jnp.float32):
    d, h = emb_dim, hidden_dim
    ks = jax.random.split(key, 13)
    bd = 1.0 / float(d) ** 0.5
    bh = 1.0 / float(h) ** 0.5
    u = lambda k, shape, b: jax.random.uniform(k, shape, dtype, -b, b)
    wq = u(ks[0], (d, d), bd)
    wk = u(ks[1], (d, d), bd)
    wv = u(ks[2], (d, d), bd)
    return dict(
        ln1_g=(1.0 + 0.1 * jax.random.normal(ks[3], (1, d), dtype)),
        ln1_b=(0.1 * jax.random.normal(ks[4], (1, d), dtype)),
        wqkv=jnp.concatenate([wq, wk, wv], axis=1),      # (D, 3D)
        wo=u(ks[5], (d, d), bd),
        bo=u(ks[6], (1, d), bd),
        ln2_g=(1.0 + 0.1 * jax.random.normal(ks[7], (1, d), dtype)),
        ln2_b=(0.1 * jax.random.normal(ks[8], (1, d), dtype)),
        w1=u(ks[9], (d, h), bd),
        b1=u(ks[10], (1, h), bd),
        w2=u(ks[11], (h, d), bh),
        b2=u(ks[12], (1, d), bh),
    )


# --------------------------------------------------------------------------
# Pure-JAX f32 reference (dropout = identity)
# --------------------------------------------------------------------------
def block_reference(z, params, heads):
    B, N, D = z.shape
    dh = D // heads

    def ln(x, g, b):
        mu = x.mean(-1, keepdims=True)
        var = ((x - mu) ** 2).mean(-1, keepdims=True)
        return (x - mu) / jnp.sqrt(var + _LN_EPS) * g + b

    x = ln(z, params["ln1_g"], params["ln1_b"])
    qkv = x @ params["wqkv"]
    q, k, v = jnp.split(qkv, 3, axis=-1)

    def to_heads(t):
        return t.reshape(B, N, heads, dh).transpose(0, 2, 1, 3)

    q, k, v = to_heads(q), to_heads(k), to_heads(v)
    s = jnp.einsum("bhqd,bhkd->bhqk", q, k) / jnp.sqrt(float(dh))
    p = jax.nn.softmax(s, axis=-1)
    o = jnp.einsum("bhqk,bhkd->bhqd", p, v)
    o = o.transpose(0, 2, 1, 3).reshape(B, N, D)
    out1 = o @ params["wo"] + params["bo"] + z

    y = ln(out1, params["ln2_g"], params["ln2_b"])
    hh = y @ params["w1"] + params["b1"]
    hh = 0.5 * hh * (1.0 + jax.lax.erf(hh / jnp.sqrt(2.0)))
    return hh @ params["w2"] + params["b2"] + out1


if __name__ == "__main__":
    # Small but lane-friendly shapes: D multiple of 128, hidden = 4*D.
    B, N, D, HEADS, H = 2, 16, 128, 4, 512

    key = jax.random.PRNGKey(0)
    kz, kp = jax.random.split(key)
    z = jax.random.normal(kz, (B, N, D), jnp.float32)
    params = init_block_params(kp, D, H)

    out = block_forward(z, params, heads=HEADS, tile_m=256)
    out = jax.block_until_ready(out)

    ref = block_reference(z, params, HEADS)
    max_err = jnp.max(jnp.abs(out - ref))
    # Tolerance loosened vs an all-f32 path: matmuls run with bf16 operands.
    assert jnp.allclose(out, ref, atol=5e-2, rtol=5e-2), (
        f"mismatch vs reference, max_abs_err={max_err}")
    print("KERNEL_OK")
</pallas_src>

<mosaic_0001>
module attributes {stable_mosaic.version = 11 : i64} {
  func.func @_ln_qkv_kernel(%arg0: i32, %arg1: memref<16x128xf32, #tpu.memory_space<vmem>>, %arg2: memref<1x128xf32, #tpu.memory_space<vmem>>, %arg3: memref<1x128xf32, #tpu.memory_space<vmem>>, %arg4: memref<128x384xbf16, #tpu.memory_space<vmem>>, %arg5: memref<16x384xbf16, #tpu.memory_space<vmem>>) attributes {dimension_semantics = [#tpu.dimension_semantics<parallel>], iteration_bounds = array<i64: 2>, scalar_prefetch = 0 : i64, scratch_operands = 0 : i64, tpu.core_type = #tpu.core_type<tc>, window_params = [{transform_indices = @transform_0, window_bounds = array<i64: 16, 128>}, {pipeline_mode = #tpu.pipeline_mode<synchronous>, transform_indices = @transform_1, window_bounds = array<i64: 1, 128>}, {pipeline_mode = #tpu.pipeline_mode<synchronous>, transform_indices = @transform_2, window_bounds = array<i64: 1, 128>}, {pipeline_mode = #tpu.pipeline_mode<synchronous>, transform_indices = @transform_3, window_bounds = array<i64: 128, 384>}, {transform_indices = @transform_4, window_bounds = array<i64: 16, 384>}]} {
    %c0 = arith.constant 0 : index
    %c0_0 = arith.constant 0 : index
    %0 = vector.load %arg1[%c0, %c0_0] : memref<16x128xf32, #tpu.memory_space<vmem>>, vector<16x128xf32>
    %c0_1 = arith.constant 0 : index
    %c0_2 = arith.constant 0 : index
    %1 = vector.load %arg2[%c0_1, %c0_2] : memref<1x128xf32, #tpu.memory_space<vmem>>, vector<1x128xf32>
    %c0_3 = arith.constant 0 : index
    %c0_4 = arith.constant 0 : index
    %2 = vector.load %arg3[%c0_3, %c0_4] : memref<1x128xf32, #tpu.memory_space<vmem>>, vector<1x128xf32>
    %cst = arith.constant dense<0.000000e+00> : vector<16xf32>
    %3 = vector.multi_reduction <add>, %0, %cst [1] : vector<16x128xf32> to vector<16xf32>
    %4 = vector.shape_cast %3 : vector<16xf32> to vector<16x1xf32>
    %cst_5 = arith.constant 1.280000e+02 : f32
    %5 = vector.broadcast %cst_5 : f32 to vector<16x1xf32>
    %6 = arith.divf %4, %5 : vector<16x1xf32>
    %7 = vector.broadcast %6 : vector<16x1xf32> to vector<16x128xf32>
    %8 = arith.subf %0, %7 : vector<16x128xf32>
    %9 = arith.mulf %8, %8 : vector<16x128xf32>
    %cst_6 = arith.constant dense<0.000000e+00> : vector<16xf32>
    %10 = vector.multi_reduction <add>, %9, %cst_6 [1] : vector<16x128xf32> to vector<16xf32>
    %11 = vector.shape_cast %10 : vector<16xf32> to vector<16x1xf32>
    %cst_7 = arith.constant 1.280000e+02 : f32
    %12 = vector.broadcast %cst_7 : f32 to vector<16x1xf32>
    %13 = arith.divf %11, %12 : vector<16x1xf32>
    %cst_8 = arith.constant 9.99999974E-6 : f32
    %14 = vector.broadcast %cst_8 : f32 to vector<16x1xf32>
    %15 = arith.addf %13, %14 : vector<16x1xf32>
    %16 = math.rsqrt %15 : vector<16x1xf32>
    %17 = vector.broadcast %16 : vector<16x1xf32> to vector<16x128xf32>
    %18 = arith.mulf %8, %17 : vector<16x128xf32>
    %19 = vector.broadcast %1 : vector<1x128xf32> to vector<16x128xf32>
    %20 = arith.mulf %18, %19 : vector<16x128xf32>
    %21 = vector.broadcast %2 : vector<1x128xf32> to vector<16x128xf32>
    %22 = arith.addf %20, %21 : vector<16x128xf32>
    %23 = arith.truncf %22 : vector<16x128xf32> to vector<16x128xbf16>
    %c0_9 = arith.constant 0 : index
    %c0_10 = arith.constant 0 : index
    %24 = vector.load %arg4[%c0_9, %c0_10] : memref<128x384xbf16, #tpu.memory_space<vmem>>, vector<128x384xbf16>
    %cst_11 = arith.constant dense<0.000000e+00> : vector<16x384xf32>
    %25 = tpu.matmul %23, %24, %cst_11 {dimension_numbers = #tpu.dot_dimension_numbers<[1], [0], [0], [1], [0, 0, 1, 1], [], []>} : vector<16x128xbf16>, vector<128x384xbf16>, vector<16x384xf32> -> vector<16x384xf32>
    %26 = arith.truncf %25 : vector<16x384xf32> to vector<16x384xbf16>
    %c0_12 = arith.constant 0 : index
    %c0_13 = arith.constant 0 : index
    %27 = vector.load %arg5[%c0_12, %c0_13] : memref<16x384xbf16, #tpu.memory_space<vmem>>, vector<16x384xbf16>
    tpu.vector_store %arg5[%c0_12, %c0_13], %26 {strides = array<i32>} : memref<16x384xbf16, #tpu.memory_space<vmem>>, vector<16x384xbf16>,
    return
  }
  func.func @transform_0(%arg0: i32) -> (i32, i32) {
    %c0_i32 = arith.constant 0 : i32
    %c0_i32_0 = arith.constant 0 : i32
    return %arg0, %c0_i32 : i32, i32
  }
  func.func @transform_1(%arg0: i32) -> (i32, i32) {
    %c0_i32 = arith.constant 0 : i32
    %c0_i32_0 = arith.constant 0 : i32
    %c0_i32_1 = arith.constant 0 : i32
    return %c0_i32, %c0_i32_0 : i32, i32
  }
  func.func @transform_2(%arg0: i32) -> (i32, i32) {
    %c0_i32 = arith.constant 0 : i32
    %c0_i32_0 = arith.constant 0 : i32
    %c0_i32_1 = arith.constant 0 : i32
    return %c0_i32, %c0_i32_0 : i32, i32
  }
  func.func @transform_3(%arg0: i32) -> (i32, i32) {
    %c0_i32 = arith.constant 0 : i32
    %c0_i32_0 = arith.constant 0 : i32
    %c0_i32_1 = arith.constant 0 : i32
    return %c0_i32, %c0_i32_0 : i32, i32
  }
  func.func @transform_4(%arg0: i32) -> (i32, i32) {
    %c0_i32 = arith.constant 0 : i32
    %c0_i32_0 = arith.constant 0 : i32
    return %arg0, %c0_i32 : i32, i32
  }
}

module attributes {stable_mosaic.version = 11 : i64} {
  func.func @_attn_proj_res_kernel(%arg0: i32, %arg1: memref<1x16x384xbf16, #tpu.memory_space<vmem>>, %arg2: memref<1x16x128xf32, #tpu.memory_space<vmem>>, %arg3: memref<128x128xbf16, #tpu.memory_space<vmem>>, %arg4: memref<1x128xf32, #tpu.memory_space<vmem>>, %arg5: memref<1x16x128xf32, #tpu.memory_space<vmem>>) attributes {dimension_semantics = [#tpu.dimension_semantics<parallel>], iteration_bounds = array<i64: 2>, scalar_prefetch = 0 : i64, scratch_operands = 0 : i64, tpu.core_type = #tpu.core_type<tc>, window_params = [{transform_indices = @transform_0, window_bounds = array<i64: 1, 16, 384>}, {transform_indices = @transform_1, window_bounds = array<i64: 1, 16, 128>}, {pipeline_mode = #tpu.pipeline_mode<synchronous>, transform_indices = @transform_2, window_bounds = array<i64: 128, 128>}, {pipeline_mode = #tpu.pipeline_mode<synchronous>, transform_indices = @transform_3, window_bounds = array<i64: 1, 128>}, {transform_indices = @transform_4, window_bounds = array<i64: 1, 16, 128>}]} {
    %c0 = arith.constant 0 : index
    %c0_0 = arith.constant 0 : index
    %c0_1 = arith.constant 0 : index
    %0 = vector.load %arg1[%c0, %c0_0, %c0_1] : memref<1x16x384xbf16, #tpu.memory_space<vmem>>, vector<1x16x384xbf16>
    %1 = vector.shape_cast %0 : vector<1x16x384xbf16> to vector<16x384xbf16>
    %cst = arith.constant 0.000000e+00 : f32
    %2 = vector.broadcast %cst : f32 to vector<16x128xf32>
    %3 = vector.extract_strided_slice %1 {offsets = [0, 0], sizes = [16, 32], strides = [1, 1]} : vector<16x384xbf16> to vector<16x32xbf16>
    %4 = vector.extract_strided_slice %1 {offsets = [0, 128], sizes = [16, 32], strides = [1, 1]} : vector<16x384xbf16> to vector<16x32xbf16>
    %5 = vector.extract_strided_slice %1 {offsets = [0, 256], sizes = [16, 32], strides = [1, 1]} : vector<16x384xbf16> to vector<16x32xbf16>
    %6 = tpu.transpose %4, [1, 0] : vector<16x32xbf16> -> vector<32x16xbf16>
    %cst_2 = arith.constant dense<0.000000e+00> : vector<16x16xf32>
    %7 = tpu.matmul %3, %6, %cst_2 {dimension_numbers = #tpu.dot_dimension_numbers<[1], [0], [0], [1], [0, 0, 1, 1], [], []>} : vector<16x32xbf16>, vector<32x16xbf16>, vector<16x16xf32> -> vector<16x16xf32>
    %cst_3 = arith.constant dense<0xFF800000> : vector<16xf32>
    %8 = vector.multi_reduction <maximumf>, %7, %cst_3 [1] : vector<16x16xf32> to vector<16xf32>
    %9 = vector.shape_cast %8 : vector<16xf32> to vector<16x1xf32>
    %10 = vector.broadcast %9 : vector<16x1xf32> to vector<16x16xf32>
    %11 = arith.subf %7, %10 : vector<16x16xf32>
    %12 = math.exp %11 : vector<16x16xf32>
    %cst_4 = arith.constant dense<0.000000e+00> : vector<16xf32>
    %13 = vector.multi_reduction <add>, %12, %cst_4 [1] : vector<16x16xf32> to vector<16xf32>
    %14 = vector.shape_cast %13 : vector<16xf32> to vector<16x1xf32>
    %15 = tpu.reciprocal %14 {approx = true} : vector<16x1xf32> -> vector<16x1xf32>
    %16 = vector.broadcast %15 : vector<16x1xf32> to vector<16x16xf32>
    %17 = arith.mulf %12, %16 : vector<16x16xf32>
    %18 = arith.truncf %17 : vector<16x16xf32> to vector<16x16xbf16>
    %cst_5 = arith.constant dense<0.000000e+00> : vector<16x32xf32>
    %19 = tpu.matmul %18, %5, %cst_5 {dimension_numbers = #tpu.dot_dimension_numbers<[1], [0], [0], [1], [0, 0, 1, 1], [], []>} : vector<16x16xbf16>, vector<16x32xbf16>, vector<16x32xf32> -> vector<16x32xf32>
    %20 = arith.truncf %19 : vector<16x32xf32> to vector<16x32xbf16>
    %c0_6 = arith.constant 0 : index
    %c0_7 = arith.constant 0 : index
    %21 = vector.load %arg3[%c0_6, %c0_7] : memref<128x128xbf16, #tpu.memory_space<vmem>>, vector<32x128xbf16>
    %cst_8 = arith.constant dense<0.000000e+00> : vector<16x128xf32>
    %22 = tpu.matmul %20, %21, %cst_8 {dimension_numbers = #tpu.dot_dimension_numbers<[1], [0], [0], [1], [0, 0, 1, 1], [], []>} : vector<16x32xbf16>, vector<32x128xbf16>, vector<16x128xf32> -> vector<16x128xf32>
    %23 = arith.addf %2, %22 : vector<16x128xf32>
    %24 = vector.extract_strided_slice %1 {offsets = [0, 32], sizes = [16, 32], strides = [1, 1]} : vector<16x384xbf16> to vector<16x32xbf16>
    %25 = vector.extract_strided_slice %1 {offsets = [0, 160], sizes = [16, 32], strides = [1, 1]} : vector<16x384xbf16> to vector<16x32xbf16>
    %26 = vector.extract_strided_slice %1 {offsets = [0, 288], sizes = [16, 32], strides = [1, 1]} : vector<16x384xbf16> to vector<16x32xbf16>
    %27 = tpu.transpose %25, [1, 0] : vector<16x32xbf16> -> vector<32x16xbf16>
    %cst_9 = arith.constant dense<0.000000e+00> : vector<16x16xf32>
    %28 = tpu.matmul %24, %27, %cst_9 {dimension_numbers = #tpu.dot_dimension_numbers<[1], [0], [0], [1], [0, 0, 1, 1], [], []>} : vector<16x32xbf16>, vector<32x16xbf16>, vector<16x16xf32> -> vector<16x16xf32>
    %cst_10 = arith.constant dense<0xFF800000> : vector<16xf32>
    %29 = vector.multi_reduction <maximumf>, %28, %cst_10 [1] : vector<16x16xf32> to vector<16xf32>
    %30 = vector.shape_cast %29 : vector<16xf32> to vector<16x1xf32>
    %31 = vector.broadcast %30 : vector<16x1xf32> to vector<16x16xf32>
    %32 = arith.subf %28, %31 : vector<16x16xf32>
    %33 = math.exp %32 : vector<16x16xf32>
    %cst_11 = arith.constant dense<0.000000e+00> : vector<16xf32>
    %34 = vector.multi_reduction <add>, %33, %cst_11 [1] : vector<16x16xf32> to vector<16xf32>
    %35 = vector.shape_cast %34 : vector<16xf32> to vector<16x1xf32>
    %36 = tpu.reciprocal %35 {approx = true} : vector<16x1xf32> -> vector<16x1xf32>
    %37 = vector.broadcast %36 : vector<16x1xf32> to vector<16x16xf32>
    %38 = arith.mulf %33, %37 : vector<16x16xf32>
    %39 = arith.truncf %38 : vector<16x16xf32> to vector<16x16xbf16>
    %cst_12 = arith.constant dense<0.000000e+00> : vector<16x32xf32>
    %40 = tpu.matmul %39, %26, %cst_12 {dimension_numbers = #tpu.dot_dimension_numbers<[1], [0], [0], [1], [0, 0, 1, 1], [], []>} : vector<16x16xbf16>, vector<16x32xbf16>, vector<16x32xf32> -> vector<16x32xf32>
    %41 = arith.truncf %40 : vector<16x32xf32> to vector<16x32xbf16>
    %c32 = arith.constant 32 : index
    %c0_13 = arith.constant 0 : index
    %42 = vector.load %arg3[%c32, %c0_13] : memref<128x128xbf16, #tpu.memory_space<vmem>>, vector<32x128xbf16>
    %cst_14 = arith.constant dense<0.000000e+00> : vector<16x128xf32>
    %43 = tpu.matmul %41, %42, %cst_14 {dimension_numbers = #tpu.dot_dimension_numbers<[1], [0], [0], [1], [0, 0, 1, 1], [], []>} : vector<16x32xbf16>, vector<32x128xbf16>, vector<16x128xf32> -> vector<16x128xf32>
    %44 = arith.addf %23, %43 : vector<16x128xf32>
    %45 = vector.extract_strided_slice %1 {offsets = [0, 64], sizes = [16, 32], strides = [1, 1]} : vector<16x384xbf16> to vector<16x32xbf16>
    %46 = vector.extract_strided_slice %1 {offsets = [0, 192], sizes = [16, 32], strides = [1, 1]} : vector<16x384xbf16> to vector<16x32xbf16>
    %47 = vector.extract_strided_slice %1 {offsets = [0, 320], sizes = [16, 32], strides = [1, 1]} : vector<16x384xbf16> to vector<16x32xbf16>
    %48 = tpu.transpose %46, [1, 0] : vector<16x32xbf16> -> vector<32x16xbf16>
    %cst_15 = arith.constant dense<0.000000e+00> : vector<16x16xf32>
    %49 = tpu.matmul %45, %48, %cst_15 {dimension_numbers = #tpu.dot_dimension_numbers<[1], [0], [0], [1], [0, 0, 1, 1], [], []>} : vector<16x32xbf16>, vector<32x16xbf16>, vector<16x16xf32> -> vector<16x16xf32>
    %cst_16 = arith.constant dense<0xFF800000> : vector<16xf32>
    %50 = vector.multi_reduction <maximumf>, %49, %cst_16 [1] : vector<16x16xf32> to vector<16xf32>
    %51 = vector.shape_cast %50 : vector<16xf32> to vector<16x1xf32>
    %52 = vector.broadcast %51 : vector<16x1xf32> to vector<16x16xf32>
    %53 = arith.subf %49, %52 : vector<16x16xf32>
    %54 = math.exp %53 : vector<16x16xf32>
    %cst_17 = arith.constant dense<0.000000e+00> : vector<16xf32>
    %55 = vector.multi_reduction <add>, %54, %cst_17 [1] : vector<16x16xf32> to vector<16xf32>
    %56 = vector.shape_cast %55 : vector<16xf32> to vector<16x1xf32>
    %57 = tpu.reciprocal %56 {approx = true} : vector<16x1xf32> -> vector<16x1xf32>
    %58 = vector.broadcast %57 : vector<16x1xf32> to vector<16x16xf32>
    %59 = arith.mulf %54, %58 : vector<16x16xf32>
    %60 = arith.truncf %59 : vector<16x16xf32> to vector<16x16xbf16>
    %cst_18 = arith.constant dense<0.000000e+00> : vector<16x32xf32>
    %61 = tpu.matmul %60, %47, %cst_18 {dimension_numbers = #tpu.dot_dimension_numbers<[1], [0], [0], [1], [0, 0, 1, 1], [], []>} : vector<16x16xbf16>, vector<16x32xbf16>, vector<16x32xf32> -> vector<16x32xf32>
    %62 = arith.truncf %61 : vector<16x32xf32> to vector<16x32xbf16>
    %c64 = arith.constant 64 : index
    %c0_19 = arith.constant 0 : index
    %63 = vector.load %arg3[%c64, %c0_19] : memref<128x128xbf16, #tpu.memory_space<vmem>>, vector<32x128xbf16>
    %cst_20 = arith.constant dense<0.000000e+00> : vector<16x128xf32>
    %64 = tpu.matmul %62, %63, %cst_20 {dimension_numbers = #tpu.dot_dimension_numbers<[1], [0], [0], [1], [0, 0, 1, 1], [], []>} : vector<16x32xbf16>, vector<32x128xbf16>, vector<16x128xf32> -> vector<16x128xf32>
    %65 = arith.addf %44, %64 : vector<16x128xf32>
    %66 = vector.extract_strided_slice %1 {offsets = [0, 96], sizes = [16, 32], strides = [1, 1]} : vector<16x384xbf16> to vector<16x32xbf16>
    %67 = vector.extract_strided_slice %1 {offsets = [0, 224], sizes = [16, 32], strides = [1, 1]} : vector<16x384xbf16> to vector<16x32xbf16>
    %68 = vector.extract_strided_slice %1 {offsets = [0, 352], sizes = [16, 32], strides = [1, 1]} : vector<16x384xbf16> to vector<16x32xbf16>
    %69 = tpu.transpose %67, [1, 0] : vector<16x32xbf16> -> vector<32x16xbf16>
    %cst_21 = arith.constant dense<0.000000e+00> : vector<16x16xf32>
    %70 = tpu.matmul %66, %69, %cst_21 {dimension_numbers = #tpu.dot_dimension_numbers<[1], [0], [0], [1], [0, 0, 1, 1], [], []>} : vector<16x32xbf16>, vector<32x16xbf16>, vector<16x16xf32> -> vector<16x16xf32>
    %cst_22 = arith.constant dense<0xFF800000> : vector<16xf32>
    %71 = vector.multi_reduction <maximumf>, %70, %cst_22 [1] : vector<16x16xf32> to vector<16xf32>
    %72 = vector.shape_cast %71 : vector<16xf32> to vector<16x1xf32>
    %73 = vector.broadcast %72 : vector<16x1xf32> to vector<16x16xf32>
    %74 = arith.subf %70, %73 : vector<16x16xf32>
    %75 = math.exp %74 : vector<16x16xf32>
    %cst_23 = arith.constant dense<0.000000e+00> : vector<16xf32>
    %76 = vector.multi_reduction <add>, %75, %cst_23 [1] : vector<16x16xf32> to vector<16xf32>
    %77 = vector.shape_cast %76 : vector<16xf32> to vector<16x1xf32>
    %78 = tpu.reciprocal %77 {approx = true} : vector<16x1xf32> -> vector<16x1xf32>
    %79 = vector.broadcast %78 : vector<16x1xf32> to vector<16x16xf32>
    %80 = arith.mulf %75, %79 : vector<16x16xf32>
    %81 = arith.truncf %80 : vector<16x16xf32> to vector<16x16xbf16>
    %cst_24 = arith.constant dense<0.000000e+00> : vector<16x32xf32>
    %82 = tpu.matmul %81, %68, %cst_24 {dimension_numbers = #tpu.dot_dimension_numbers<[1], [0], [0], [1], [0, 0, 1, 1], [], []>} : vector<16x16xbf16>, vector<16x32xbf16>, vector<16x32xf32> -> vector<16x32xf32>
    %83 = arith.truncf %82 : vector<16x32xf32> to vector<16x32xbf16>
    %c96 = arith.constant 96 : index
    %c0_25 = arith.constant 0 : index
    %84 = vector.load %arg3[%c96, %c0_25] : memref<128x128xbf16, #tpu.memory_space<vmem>>, vector<32x128xbf16>
    %cst_26 = arith.constant dense<0.000000e+00> : vector<16x128xf32>
    %85 = tpu.matmul %83, %84, %cst_26 {dimension_numbers = #tpu.dot_dimension_numbers<[1], [0], [0], [1], [0, 0, 1, 1], [], []>} : vector<16x32xbf16>, vector<32x128xbf16>, vector<16x128xf32> -> vector<16x128xf32>
    %86 = arith.addf %65, %85 : vector<16x128xf32>
    %c0_27 = arith.constant 0 : index
    %c0_28 = arith.constant 0 : index
    %87 = vector.load %arg4[%c0_27, %c0_28] : memref<1x128xf32, #tpu.memory_space<vmem>>, vector<1x128xf32>
    %88 = vector.broadcast %87 : vector<1x128xf32> to vector<16x128xf32>
    %89 = arith.addf %86, %88 : vector<16x128xf32>
    %c0_29 = arith.constant 0 : index
    %c0_30 = arith.constant 0 : index
    %c0_31 = arith.constant 0 : index
    %90 = vector.load %arg2[%c0_29, %c0_30, %c0_31] : memref<1x16x128xf32, #tpu.memory_space<vmem>>, vector<1x16x128xf32>
    %91 = vector.shape_cast %90 : vector<1x16x128xf32> to vector<16x128xf32>
    %92 = arith.addf %89, %91 : vector<16x128xf32>
    %c0_32 = arith.constant 0 : index
    %c0_33 = arith.constant 0 : index
    %c0_34 = arith.constant 0 : index
    %93 = vector.load %arg5[%c0_32, %c0_33, %c0_34] : memref<1x16x128xf32, #tpu.memory_space<vmem>>, vector<1x16x128xf32>
    %94 = vector.shape_cast %93 : vector<1x16x128xf32> to vector<16x128xf32>
    %95 = vector.shape_cast %92 : vector<16x128xf32> to vector<1x16x128xf32>
    tpu.vector_store %arg5[%c0_32, %c0_33, %c0_34], %95 {strides = array<i32>} : memref<1x16x128xf32, #tpu.memory_space<vmem>>, vector<1x16x128xf32>,
    return
  }
  func.func @transform_0(%arg0: i32) -> (i32, i32, i32) {
    %c0_i32 = arith.constant 0 : i32
    %c0_i32_0 = arith.constant 0 : i32
    %c0_i32_1 = arith.constant 0 : i32
    return %arg0, %c0_i32, %c0_i32_0 : i32, i32, i32
  }
  func.func @transform_1(%arg0: i32) -> (i32, i32, i32) {
    %c0_i32 = arith.constant 0 : i32
    %c0_i32_0 = arith.constant 0 : i32
    %c0_i32_1 = arith.constant 0 : i32
    return %arg0, %c0_i32, %c0_i32_0 : i32, i32, i32
  }
  func.func @transform_2(%arg0: i32) -> (i32, i32) {
    %c0_i32 = arith.constant 0 : i32
    %c0_i32_0 = arith.constant 0 : i32
    %c0_i32_1 = arith.constant 0 : i32
    return %c0_i32, %c0_i32_0 : i32, i32
  }
  func.func @transform_3(%arg0: i32) -> (i32, i32) {
    %c0_i32 = arith.constant 0 : i32
    %c0_i32_0 = arith.constant 0 : i32
    %c0_i32_1 = arith.constant 0 : i32
    return %c0_i32, %c0_i32_0 : i32, i32
  }
  func.func @transform_4(%arg0: i32) -> (i32, i32, i32) {
    %c0_i32 = arith.constant 0 : i32
    %c0_i32_0 = arith.constant 0 : i32
    %c0_i32_1 = arith.constant 0 : i32
    return %arg0, %c0_i32, %c0_i32_0 : i32, i32, i32
  }
}

module attributes {stable_mosaic.version = 11 : i64} {
  func.func @_ln_ffn_residual_kernel(%arg0: i32, %arg1: memref<16x128xf32, #tpu.memory_space<vmem>>, %arg2: memref<1x128xf32, #tpu.memory_space<vmem>>, %arg3: memref<1x128xf32, #tpu.memory_space<vmem>>, %arg4: memref<128x512xbf16, #tpu.memory_space<vmem>>, %arg5: memref<1x512xf32, #tpu.memory_space<vmem>>, %arg6: memref<512x128xbf16, #tpu.memory_space<vmem>>, %arg7: memref<1x128xf32, #tpu.memory_space<vmem>>, %arg8: memref<16x128xf32, #tpu.memory_space<vmem>>) attributes {dimension_semantics = [#tpu.dimension_semantics<parallel>], iteration_bounds = array<i64: 2>, scalar_prefetch = 0 : i64, scratch_operands = 0 : i64, tpu.core_type = #tpu.core_type<tc>, window_params = [{transform_indices = @transform_0, window_bounds = array<i64: 16, 128>}, {pipeline_mode = #tpu.pipeline_mode<synchronous>, transform_indices = @transform_1, window_bounds = array<i64: 1, 128>}, {pipeline_mode = #tpu.pipeline_mode<synchronous>, transform_indices = @transform_2, window_bounds = array<i64: 1, 128>}, {pipeline_mode = #tpu.pipeline_mode<synchronous>, transform_indices = @transform_3, window_bounds = array<i64: 128, 512>}, {pipeline_mode = #tpu.pipeline_mode<synchronous>, transform_indices = @transform_4, window_bounds = array<i64: 1, 512>}, {pipeline_mode = #tpu.pipeline_mode<synchronous>, transform_indices = @transform_5, window_bounds = array<i64: 512, 128>}, {pipeline_mode = #tpu.pipeline_mode<synchronous>, transform_indices = @transform_6, window_bounds = array<i64: 1, 128>}, {transform_indices = @transform_7, window_bounds = array<i64: 16, 128>}]} {
    %c0 = arith.constant 0 : index
    %c0_0 = arith.constant 0 : index
    %0 = vector.load %arg1[%c0, %c0_0] : memref<16x128xf32, #tpu.memory_space<vmem>>, vector<16x128xf32>
    %c0_1 = arith.constant 0 : index
    %c0_2 = arith.constant 0 : index
    %1 = vector.load %arg2[%c0_1, %c0_2] : memref<1x128xf32, #tpu.memory_space<vmem>>, vector<1x128xf32>
    %c0_3 = arith.constant 0 : index
    %c0_4 = arith.constant 0 : index
    %2 = vector.load %arg3[%c0_3, %c0_4] : memref<1x128xf32, #tpu.memory_space<vmem>>, vector<1x128xf32>
    %cst = arith.constant dense<0.000000e+00> : vector<16xf32>
    %3 = vector.multi_reduction <add>, %0, %cst [1] : vector<16x128xf32> to vector<16xf32>
    %4 = vector.shape_cast %3 : vector<16xf32> to vector<16x1xf32>
    %cst_5 = arith.constant 1.280000e+02 : f32
    %5 = vector.broadcast %cst_5 : f32 to vector<16x1xf32>
    %6 = arith.divf %4, %5 : vector<16x1xf32>
    %7 = vector.broadcast %6 : vector<16x1xf32> to vector<16x128xf32>
    %8 = arith.subf %0, %7 : vector<16x128xf32>
    %9 = arith.mulf %8, %8 : vector<16x128xf32>
    %cst_6 = arith.constant dense<0.000000e+00> : vector<16xf32>
    %10 = vector.multi_reduction <add>, %9, %cst_6 [1] : vector<16x128xf32> to vector<16xf32>
    %11 = vector.shape_cast %10 : vector<16xf32> to vector<16x1xf32>
    %cst_7 = arith.constant 1.280000e+02 : f32
    %12 = vector.broadcast %cst_7 : f32 to vector<16x1xf32>
    %13 = arith.divf %11, %12 : vector<16x1xf32>
    %cst_8 = arith.constant 9.99999974E-6 : f32
    %14 = vector.broadcast %cst_8 : f32 to vector<16x1xf32>
    %15 = arith.addf %13, %14 : vector<16x1xf32>
    %16 = math.rsqrt %15 : vector<16x1xf32>
    %17 = vector.broadcast %16 : vector<16x1xf32> to vector<16x128xf32>
    %18 = arith.mulf %8, %17 : vector<16x128xf32>
    %19 = vector.broadcast %1 : vector<1x128xf32> to vector<16x128xf32>
    %20 = arith.mulf %18, %19 : vector<16x128xf32>
    %21 = vector.broadcast %2 : vector<1x128xf32> to vector<16x128xf32>
    %22 = arith.addf %20, %21 : vector<16x128xf32>
    %23 = arith.truncf %22 : vector<16x128xf32> to vector<16x128xbf16>
    %c0_9 = arith.constant 0 : index
    %c0_10 = arith.constant 0 : index
    %24 = vector.load %arg4[%c0_9, %c0_10] : memref<128x512xbf16, #tpu.memory_space<vmem>>, vector<128x512xbf16>
    %cst_11 = arith.constant dense<0.000000e+00> : vector<16x512xf32>
    %25 = tpu.matmul %23, %24, %cst_11 {dimension_numbers = #tpu.dot_dimension_numbers<[1], [0], [0], [1], [0, 0, 1, 1], [], []>} : vector<16x128xbf16>, vector<128x512xbf16>, vector<16x512xf32> -> vector<16x512xf32>
    %c0_12 = arith.constant 0 : index
    %c0_13 = arith.constant 0 : index
    %26 = vector.load %arg5[%c0_12, %c0_13] : memref<1x512xf32, #tpu.memory_space<vmem>>, vector<1x512xf32>
    %27 = vector.broadcast %26 : vector<1x512xf32> to vector<16x512xf32>
    %28 = arith.addf %25, %27 : vector<16x512xf32>
    %cst_14 = arith.constant 5.000000e-01 : f32
    %29 = vector.broadcast %cst_14 : f32 to vector<16x512xf32>
    %30 = arith.mulf %29, %28 : vector<16x512xf32>
    %cst_15 = arith.constant 0.707106769 : f32
    %31 = vector.broadcast %cst_15 : f32 to vector<16x512xf32>
    %32 = arith.mulf %28, %31 : vector<16x512xf32>
    %33 = math.erf %32 : vector<16x512xf32>
    %cst_16 = arith.constant 1.000000e+00 : f32
    %34 = vector.broadcast %cst_16 : f32 to vector<16x512xf32>
    %35 = arith.addf %34, %33 : vector<16x512xf32>
    %36 = arith.mulf %30, %35 : vector<16x512xf32>
    %37 = arith.truncf %36 : vector<16x512xf32> to vector<16x512xbf16>
    %c0_17 = arith.constant 0 : index
    %c0_18 = arith.constant 0 : index
    %38 = vector.load %arg6[%c0_17, %c0_18] : memref<512x128xbf16, #tpu.memory_space<vmem>>, vector<512x128xbf16>
    %cst_19 = arith.constant dense<0.000000e+00> : vector<16x128xf32>
    %39 = tpu.matmul %37, %38, %cst_19 {dimension_numbers = #tpu.dot_dimension_numbers<[1], [0], [0], [1], [0, 0, 1, 1], [], []>} : vector<16x512xbf16>, vector<512x128xbf16>, vector<16x128xf32> -> vector<16x128xf32>
    %c0_20 = arith.constant 0 : index
    %c0_21 = arith.constant 0 : index
    %40 = vector.load %arg7[%c0_20, %c0_21] : memref<1x128xf32, #tpu.memory_space<vmem>>, vector<1x128xf32>
    %41 = vector.broadcast %40 : vector<1x128xf32> to vector<16x128xf32>
    %42 = arith.addf %39, %41 : vector<16x128xf32>
    %43 = arith.addf %42, %0 : vector<16x128xf32>
    %c0_22 = arith.constant 0 : index
    %c0_23 = arith.constant 0 : index
    %44 = vector.load %arg8[%c0_22, %c0_23] : memref<16x128xf32, #tpu.memory_space<vmem>>, vector<16x128xf32>
    tpu.vector_store %arg8[%c0_22, %c0_23], %43 {strides = array<i32>} : memref<16x128xf32, #tpu.memory_space<vmem>>, vector<16x128xf32>,
    return
  }
  func.func @transform_0(%arg0: i32) -> (i32, i32) {
    %c0_i32 = arith.constant 0 : i32
    %c0_i32_0 = arith.constant 0 : i32
    return %arg0, %c0_i32 : i32, i32
  }
  func.func @transform_1(%arg0: i32) -> (i32, i32) {
    %c0_i32 = arith.constant 0 : i32
    %c0_i32_0 = arith.constant 0 : i32
    %c0_i32_1 = arith.constant 0 : i32
    return %c0_i32, %c0_i32_0 : i32, i32
  }
  func.func @transform_2(%arg0: i32) -> (i32, i32) {
    %c0_i32 = arith.constant 0 : i32
    %c0_i32_0 = arith.constant 0 : i32
    %c0_i32_1 = arith.constant 0 : i32
    return %c0_i32, %c0_i32_0 : i32, i32
  }
  func.func @transform_3(%arg0: i32) -> (i32, i32) {
    %c0_i32 = arith.constant 0 : i32
    %c0_i32_0 = arith.constant 0 : i32
    %c0_i32_1 = arith.constant 0 : i32
    return %c0_i32, %c0_i32_0 : i32, i32
  }
  func.func @transform_4(%arg0: i32) -> (i32, i32) {
    %c0_i32 = arith.constant 0 : i32
    %c0_i32_0 = arith.constant 0 : i32
    %c0_i32_1 = arith.constant 0 : i32
    return %c0_i32, %c0_i32_0 : i32, i32
  }
  func.func @transform_5(%arg0: i32) -> (i32, i32) {
    %c0_i32 = arith.constant 0 : i32
    %c0_i32_0 = arith.constant 0 : i32
    %c0_i32_1 = arith.constant 0 : i32
    return %c0_i32, %c0_i32_0 : i32, i32
  }
  func.func @transform_6(%arg0: i32) -> (i32, i32) {
    %c0_i32 = arith.constant 0 : i32
    %c0_i32_0 = arith.constant 0 : i32
    %c0_i32_1 = arith.constant 0 : i32
    return %c0_i32, %c0_i32_0 : i32, i32
  }
  func.func @transform_7(%arg0: i32) -> (i32, i32) {
    %c0_i32 = arith.constant 0 : i32
    %c0_i32_0 = arith.constant 0 : i32
    return %arg0, %c0_i32 : i32, i32
  }
}

</mosaic_0001>

<bundles_post_ra>
// kernel: block_forward.3
= control target key start
LH: loop header
LB: loop body
LE: loop exit
PB: predicated region body
PF: predicated region fallthrough
CT: control target
= control target key end

     0   :  { %9 = vsyncpa [#allocation3], 0  ;;  %s1401_s0 = inlined_call_operand.hbm [shape: f32[32,128], index: 0, kind: input, shape index: {}]   ;;  %s1402_s1 = inlined_call_operand.hbm [shape: f32[1,128], index: 1, kind: input, shape index: {}]   ;;  %s1403_s2 = inlined_call_operand.hbm [shape: f32[1,128], index: 2, kind: input, shape index: {}]   ;;  %s1404_s3 = inlined_call_operand.hbm [shape: bf16[128,384], index: 3, kind: input, shape index: {}]   ;;  %s1405_s4 = inlined_call_operand.hbm [shape: bf16[32,384], index: 4, kind: output, shape index: {}]  }
   0x1   :  { %11 = vsyncpa [#allocation3 + $0x1], 0 }
   0x2   :  { %12 = vsyncpa [#allocation6], 0 }
   0x3   :  { %13 = vsyncpa [#allocation9], 0 }
   0x4   :  { %14 = vsyncpa [#allocation4], 0 }
   0x5   :  { %16 = vsyncpa [#allocation4 + $0x1], 0  ;;  %s1124_s15 = smov 0   ;;  %s1126_s16 = smov 0  }
   0x6   :  { %s1128_s17 = smov 0   ;;  %s1130_s18 = smov 0  }
   0x7 LB: > { %s1145_s19 = sadd.s32 4294967295, %s1083_s18   ;;  %s688_s20 = sadd.s32 4294967294, %s1083_s18   ;;  %s1083_s18 = sphi %s1130_s18, %s1428_s18   ;;  %s1079_s17 = sphi %s1128_s17, %s1427_s17   ;;  %s1075_s16 = sphi %s1126_s16, %s1426_s16   ;;  %s1071_s15 = sphi %s1124_s15, %s1425_s15  }
   0x8   : > { %p42_p0 = scmp.ne.s32.totalorder %s1075_s16, %s1071_s15  ;;  %p1406_p1 = scmp.eq.s32.totalorder %s1145_s19, 0 }
   0x9   : > { %p135_p3 = scmp.eq.s32.totalorder %s688_s20, 1  ;;  %p689_p5 = scmp.ge.s32.totalorder %s1083_s18, 1 }
   0xa   : > { %p1154_p4 = por %p1406_p1, %p42_p0  ;;  %p142_p7 = scmp.lt.s32.totalorder %s1083_s18, 3 }
   0xb   : > { %p1159_p6 = por %p135_p3, %p42_p0  ;;  %s1085_s24 = smov [#allocation5]  }
   0xc   : > { %s1409_s21 = scalar_select %p1154_p4, 1, 0 }
   0xd   : > { %s1410_s22 = scalar_select %p1159_p6, 1, 0 }
   0xe   : > { %p1164_p8 = pnand %p689_p5, %p142_p7  ;;  %s155_s25 = sshll.u32 %s1085_s24, 4  ;;  %s156_s25 = int_to_ptr.vmem [resolvable:$true] %s155_s25 }
   0xf   : > { %s1086_s26 = smov [#allocation7]   ;;  %s1087_s29 = smov [#allocation8]  }
  0x10   : > { %s1411_s23 = scalar_select %p1164_p8, 1, 0 }
  0x11   : > { %p789_p10 = pneg %p1164_p8  ;;  %s166_s27 = sshll.u32 %s1086_s26, 4  ;;  %s1177_s27 = int_to_ptr.vmem [resolvable:$true] %s166_s27 }
  0x12   : > { %s176_s30 = sshll.u32 %s1087_s29, 4  ;;  %s895_s7 = scalar_lea.hbm %s1402_s1, 16  ;;  %s1179_s30 = int_to_ptr.vmem [resolvable:$true] %s176_s30 }
  0x13   : > { %p1173_p11 = pnand %p789_p10, %p1406_p1  ;;  %p896_p12 = scmp.ne.s32.totalorder %s1402_s1, %s895_s7 }
  0x14   : > { %p902_p5 = scmp.lt.u32.totalorder %s895_s7, %s1402_s1 }
  0x15   : > { %p1189_p13 = pneg %p1173_p11 }
  0x17   : > { %p898_p0 = pnand %p1189_p13, %p896_p12 }
  0x19   : > { %p899_p3 = pneg %p898_p0 }
  0x1b   : > { %p904_p7 = pnand %p902_p5, %p899_p3 }
  0x1d   : > { %907 = shalt.err (!%p904_p7)
}
  0x1e   : > { %s908_s13 = scalar_lea.vmem %s156_s25, 16  ;;  %s915_s14 = scalar_lea.vmem %s156_s25, 32 }
  0x1f   : > { %p909_p10 = scmp.ne.s32.totalorder %s156_s25, %s908_s13  ;;  %p916_p2 = scmp.lt.s32.totalorder %s156_s25, %s156_s25 }
  0x20   : > { %p917_p6 = scmp.lt.s32.totalorder %s915_s14, %s908_s13 }
  0x21   : > { %p911_p9 = pnand %p909_p10, %p1189_p13 }
  0x22   : > { %p918_p4 = por %p917_p6, %p916_p2 }
  0x23   : > { %p912_p1 = pneg %p911_p9 }
  0x25   : > { %p919_p8 = pnand %p918_p4, %p912_p1 }
  0x27   : > { %922 = shalt.err (!%p919_p8)
}
  0x28   : > { %792 = dma.hbm_to_vmem [thread:$0]  (!%p1173_p11), %s1402_s1, 16, %s156_s25, [#allocation6]  }
  0x29   : > { %s923_s5 = scalar_lea.hbm %s1403_s2, 16 }
  0x2a   : > { %p924_p9 = scmp.ne.s32.totalorder %s1403_s2, %s923_s5  ;;  %p930_p1 = scmp.lt.u32.totalorder %s923_s5, %s1403_s2 }
  0x2c   : > { %p926_p12 = pnand %p924_p9, %p1189_p13 }
  0x2e   : > { %p927_p2 = pneg %p926_p12 }
  0x30   : > { %p932_p4 = pnand %p930_p1, %p927_p2 }
  0x32   : > { %935 = shalt.err (!%p932_p4)
}
  0x33   : > { %s936_s25 = scalar_lea.vmem %s1177_s27, 16  ;;  %s943_s11 = scalar_lea.vmem %s1177_s27, 32 }
  0x34   : > { %p937_p6 = scmp.ne.s32.totalorder %s1177_s27, %s936_s25  ;;  %p944_p3 = scmp.lt.s32.totalorder %s1177_s27, %s1177_s27 }
  0x35   : > { %p945_p5 = scmp.lt.s32.totalorder %s943_s11, %s936_s25 }
  0x36   : > { %p939_p8 = pnand %p937_p6, %p1189_p13 }
  0x37   : > { %p946_p7 = por %p945_p5, %p944_p3 }
  0x38   : > { %p940_p0 = pneg %p939_p8 }
  0x3a   : > { %p947_p10 = pnand %p946_p7, %p940_p0 }
  0x3c   : > { %950 = shalt.err (!%p947_p10)
}
  0x3d   : > { %795 = dma.hbm_to_vmem [thread:$0]  (!%p1173_p11), %s1403_s2, 16, %s1177_s27, [#allocation6]  }
  0x3e   : > { %s951_s24 = scalar_lea.hbm %s1404_s3, 3072 }
  0x3f   : > { %p952_p9 = scmp.ne.s32.totalorder %s1404_s3, %s951_s24  ;;  %p958_p1 = scmp.lt.u32.totalorder %s951_s24, %s1404_s3 }
  0x41   : > { %p954_p12 = pnand %p952_p9, %p1189_p13 }
  0x43   : > { %p955_p2 = pneg %p954_p12 }
  0x45   : > { %p960_p4 = pnand %p958_p1, %p955_p2 }
  0x47   : > { %963 = shalt.err (!%p960_p4)
}
  0x48   : > { %s964_s27 = scalar_lea.vmem %s1179_s30, 3072  ;;  %p972_p3 = scmp.lt.s32.totalorder %s1179_s30, %s1179_s30 }
  0x49   : > { %p965_p6 = scmp.ne.s32.totalorder %s1179_s30, %s964_s27  ;;  %p973_p5 = scmp.lt.s32.totalorder %s964_s27, %s964_s27 }
  0x4b   : > { %p967_p8 = pnand %p965_p6, %p1189_p13  ;;  %p974_p7 = por %p973_p5, %p972_p3 }
  0x4d   : > { %p968_p0 = pneg %p967_p8 }
  0x4f   : > { %p975_p10 = pnand %p974_p7, %p968_p0 }
  0x51   : > { %978 = shalt.err (!%p975_p10)
}
  0x52   : > { %s1088_s7 = smov 192   ;;  %s1089_s10 = smov 12  }
  0x53   : > { %798 = dma.hbm_to_vmem [thread:$0]  (!%p1173_p11), %s1404_s3, 3072, %s1179_s30, [#allocation9], %s1088_s7, %s1088_s7, %s1089_s10  }
  0x54   : > { %s1253_s25 = sadd.s32 1, %s1083_s18   ;;  %s29_s12 = sadd.s32 1, %s1079_s17 }
  0x55   : > { %s26_s11 = ssub.s32 %s1083_s18, %s1253_s25  ;;  %p36_p9 = scmp.ne.s32.totalorder %s1079_s17, %s1075_s16 }
  0x56   : > { %p27_p13 = scmp.eq.s32.totalorder %s26_s11, 0  ;;  %p37_p12 = scmp.eq.s32.totalorder %s1083_s18, 0 }
  0x57   : > { %p810_p2 = scmp.lt.s32.totalorder %s1083_s18, 2  ;;  %p1414_p4 = scmp.eq.s32.totalorder %s1145_s19, 1 }
  0x58   : > { %s1263_s13 = scalar_select %p27_p13, %s1079_s17, %s29_s12  }
  0x59   : > { %p38_p1 = por %p37_p12, %p36_p9  ;;  %p1267_p6 = por %p1414_p4, %p36_p9 }
  0x5a   : > { %s190_s28 = sand.u32 1, %s1079_s17   ;;  %s737_s20 = sshll.u32 %s1083_s18, 8 }
  0x5b   : > { %s694_s30 = sshll.u32 %s190_s28, 4  ;;  %s1276_s29 = scalar_lea.hbm %s1401_s0, %s737_s20 }
  0x5c   : > { %s194_s5 = scalar_lea.vmem [#allocation2], %s694_s30  ;;  %p1278_p11 = pnand %p810_p2, %p38_p1 }
  0x5d   : > { %s201_s6 = sshll.u32 %s194_s5, 4  ;;  %s1284_s7 = scalar_lea.sflag [#allocation3], %s190_s28  ;;  %s1282_s6 = int_to_ptr.vmem [resolvable:$true] %s201_s6 }
  0x5e   : > { %s979_s10 = scalar_lea.hbm %s1276_s29, 256  ;;  %p981_p0 = pneg %p1278_p11 }
  0x5f   : > { %p980_p8 = scmp.ne.s32.totalorder %s1276_s29, %s979_s10  ;;  %s984_s11 = scalar_lea.hbm %s1401_s0, 512 }
  0x60   : > { %p985_p7 = scmp.lt.u32.totalorder %s1276_s29, %s1401_s0  ;;  %p986_p10 = scmp.lt.u32.totalorder %s984_s11, %s979_s10 }
  0x61   : > { %p982_p3 = pnand %p981_p0, %p980_p8  ;;  %p988_p9 = scmp.lt.u32.totalorder %s979_s10, %s1276_s29 }
  0x62   : > { %p987_p13 = por %p986_p10, %p985_p7 }
  0x63   : > { %p983_p5 = pneg %p982_p3 }
  0x64   : > { %p989_p12 = por %p988_p9, %p987_p13 }
  0x66   : > { %p990_p2 = pnand %p989_p12, %p983_p5 }
  0x68   : > { %993 = shalt.err (!%p990_p2)
}
  0x69   : > { %s994_s28 = scalar_lea.vmem %s1282_s6, 256  ;;  %s1090_s30 = smov [#allocation2]  }
  0x6a   : > { %p995_p1 = scmp.ne.s32.totalorder %s1282_s6, %s994_s28  ;;  %s999_s24 = sshll.u32 %s1090_s30, 4  ;;  %s1000_s24 = int_to_ptr.vmem [resolvable:$false] %s999_s24 }
  0x6b   : > { %s1001_s26 = scalar_lea.vmem %s1000_s24, 512  ;;  %p1002_p3 = scmp.lt.s32.totalorder %s1282_s6, %s1000_s24 }
  0x6c   : > { %p997_p4 = pnand %p995_p1, %p981_p0  ;;  %p1003_p7 = scmp.lt.s32.totalorder %s1001_s26, %s994_s28 }
  0x6e   : > { %p998_p8 = pneg %p997_p4  ;;  %p1004_p10 = por %p1003_p7, %p1002_p3 }
  0x70   : > { %p1005_p13 = pnand %p1004_p10, %p998_p8 }
  0x72   : > { %1008 = shalt.err (!%p1005_p13)
}
  0x73   : > { %s1091_s5 = smov 128   ;;  %s1092_s10 = smov 8  }
  0x74   : > { %802 = dma.hbm_to_vmem [thread:$0]  (!%p1278_p11), %s1276_s29, 256, %s1282_s6, %s1284_s7, %s1091_s5, %s1091_s5, %s1092_s10  }
  0x75   : > { %p1417_p0 = scmp.ne.s32.totalorder %s1411_s23, 0 }
  0x76   : > { %s1315_s8 = sand.u32 (!%p1417_p0), 1, %s1075_s16   ;;  %p1418_p5 = scmp.ne.s32.totalorder (!%p1417_p0), %s1409_s21, 0 }
  0x77   : > { %213 = sbr.rel (%p1417_p0) target bundleno = 683 (0x2ab), region = 36  ;;  %s698_s9 = sshll.u32 (!%p1417_p0), %s1315_s8, 4 }
  0x78   : > { %s216_s11 = scalar_lea.sflag (!%p1417_p0), [#allocation3], %s1315_s8  ;;  %s219_s12 = scalar_lea.vmem (!%p1417_p0), [#allocation2], %s698_s9 }
  0x7e   : > { %1054 = dma.done.wait (%p1418_p5), %s216_s11, 256  }
  0x7f   : > { %1056 = vsyncadd (%p1418_p5), %s216_s11, 4294967040  ;;  %p1419_p9 = scmp.eq.s32.totalorder %s1145_s19, 0 }
  0x81   : > { %1058 = dma.done.wait (%p1419_p9), [#allocation6], 32   ;;  %p1420_p11 = pmov %p1419_p9 }
  0x82   : > { %p1421_p12 = pmov %p1419_p9 }
  0x83   : > { %1060 = vsyncadd (%p1420_p11), [#allocation6], 4294967264 }
  0x84   : > { %1062 = dma.done.wait (%p1421_p12), [#allocation9], 3072   ;;  %p1422_p2 = pmov %p1419_p9 }
  0x85   : > { %v259_v0 = vld [vmem:[%s219_s12] sm:$0xff]  ;;  %v260_v1 = vld [vmem:[%s219_s12 + $0x8] sm:$0xff]  ;;  %v1093_v4 = vmov 0.0   ;;  %v1094_v30 = vmov 0   ;;  %vm1095_vm0 = vmmov 0   ;;  %s771_s21 = smul.u32 24, %s1315_s8 }
  0x86   : > { %1064 = vsyncadd (%p1422_p2), [#allocation9], 4294964224  ;;  %263 = vadd.xlane.f32.xlu0 %v259_v0  ;;  %v859_v2 = vld [vmem:[#allocation8 + $0x4] ss:$12 sps:$4 sm:$0xff]   ;;  %v861_v3 = vld [vmem:[#allocation8] ss:$12 sps:$4 sm:$0xff]   ;;  %751 = vmatprep.subr.bf16.mxu1 %v1093_v4 }
  0x87   : > { %v862_v5 = vld [vmem:[#allocation8 + $0x8] ss:$12 sps:$4 sm:$0xff]   ;;  %463 = vmatprep.subr.bf16.mxu0 %v859_v2  ;;  %v865_v15 = vld [vmem:[#allocation8 + $0x18] ss:$12 sps:$4 sm:$0xff]   ;;  %v866_v16 = vld [vmem:[#allocation8 + $0x20] ss:$12 sps:$4 sm:$0xff]   ;;  %495 = vmatprep.mubr.bf16.mxu0 %v1094_v30 }
  0x88   : > { %v863_v6 = vld [vmem:[#allocation8 + $0x1c] ss:$12 sps:$4 sm:$0xff]   ;;  %464 = vmatpush1.bf16.msra.mxu0 %v861_v3  ;;  %752 = vmatpush3.bf16.msra.mxu1 %v862_v5  ;;  %v867_v17 = vld [vmem:[#allocation8 + $0x34] ss:$12 sps:$4 sm:$0xff]   ;;  %v870_v19 = vld [vmem:[#allocation8 + $0x38] ss:$12 sps:$4 sm:$0xff]  }
  0x89   : > { %465 = vmatprep.subr.bf16.mxu0 %v863_v6  ;;  %753 = vmatprep.subr.bf16.mxu1 %v1093_v4  ;;  %v869_v18 = vld [vmem:[#allocation8 + $0x30] ss:$12 sps:$4 sm:$0xff]   ;;  %v871_v20 = vld [vmem:[#allocation8 + $0x4c] ss:$12 sps:$4 sm:$0xff]   ;;  %v873_v21 = vld [vmem:[#allocation8 + $0x48] ss:$12 sps:$4 sm:$0xff]  }
  0x8a   : > { %265 = vadd.xlane.f32.xlu0 %v260_v1  ;;  %v874_v22 = vld [vmem:[#allocation8 + $0x50] ss:$12 sps:$4 sm:$0xff]   ;;  %v877_v24 = vld [vmem:[#allocation8 + $0x60] ss:$12 sps:$4 sm:$0xff]   ;;  %v878_v25 = vld [vmem:[#allocation8 + $0x68] ss:$12 sps:$4 sm:$0xff]   ;;  %767 = vmatprep.mubr.msk.bf16.mxu1 %vm1095_vm0, %v1093_v4 }
  0x8b   : > { %v875_v23 = vld [vmem:[#allocation8 + $0x64] ss:$12 sps:$4 sm:$0xff]   ;;  %v879_v26 = vld [vmem:[#allocation8 + $0x7c] ss:$12 sps:$4 sm:$0xff]   ;;  %v882_v28 = vld [vmem:[#allocation8 + $0x80] ss:$12 sps:$4 sm:$0xff]  }
  0x8c   : > { %466 = vmatpush1.bf16.msra.mxu0 %v865_v15  ;;  %754 = vmatpush3.bf16.msra.mxu1 %v866_v16  ;;  %v881_v27 = vld [vmem:[#allocation8 + $0x78] ss:$12 sps:$4 sm:$0xff]   ;;  %v883_v29 = vld [vmem:[#allocation8 + $0x94] ss:$12 sps:$4 sm:$0xff]   ;;  %v885_v31 = vld [vmem:[#allocation8 + $0x90] ss:$12 sps:$4 sm:$0xff]  }
  0x8d   : > { %755 = vmatprep.subr.bf16.mxu1 %v1093_v4  ;;  %467 = vmatprep.subr.bf16.mxu0 %v867_v17  ;;  %v886_v32 = vld [vmem:[#allocation8 + $0x98] ss:$12 sps:$4 sm:$0xff]   ;;  %v889_v34 = vld [vmem:[#allocation8 + $0xa8] ss:$12 sps:$4 sm:$0xff]   ;;  %v890_v35 = vld [vmem:[#allocation8 + $0xb0] ss:$12 sps:$4 sm:$0xff]  }
  0x8e   : > { %v887_v33 = vld [vmem:[#allocation8 + $0xac] ss:$12 sps:$4 sm:$0xff]   ;;  %v702_v44 = vld [vmem:[#allocation5] ss:$0 sm:$0xff]  ;;  %v703_v48 = vld [vmem:[#allocation7] ss:$0 sm:$0xff] }
  0x8f   : > { %s255_s23 = scalar_lea.vmem [#allocation10], %s771_s21  ;;  %s772_s6 = smul.u32 384, %s1145_s19 }
  0x90   : > { %468 = vmatpush1.bf16.msra.mxu0 %v869_v18  ;;  %756 = vmatpush3.bf16.msra.mxu1 %v870_v19  ;;  %s586_s29 = sshll.u32 %s255_s23, 4  ;;  %s572_s20 = scalar_lea.sflag [#allocation4], %s1315_s8  ;;  %s1352_s29 = int_to_ptr.vmem [resolvable:$true] %s586_s29 }
  0x91   : > { %757 = vmatprep.subr.bf16.mxu1 %v1093_v4  ;;  %469 = vmatprep.subr.bf16.mxu0 %v871_v20  ;;  %s1357_s7 = scalar_lea.hbm %s1405_s4, %s772_s6  ;;  %s1009_s28 = scalar_lea.vmem %s1352_s29, 384 }
  0x92   : > { %p1010_p1 = scmp.ne.s32.totalorder %s1352_s29, %s1009_s28  ;;  %s1096_s30 = smov [#allocation10]  }
  0x93   : > { %s1013_s24 = sshll.u32 %s1096_s30, 4  ;;  %s1014_s24 = int_to_ptr.vmem [resolvable:$false] %s1013_s24 }
  0x94   : > { %470 = vmatpush1.bf16.msra.mxu0 %v873_v21  ;;  %758 = vmatpush3.bf16.msra.mxu1 %v874_v22  ;;  %p1011_p4 = pnand %p1010_p1, %p1267_p6  ;;  %s1015_s26 = scalar_lea.vmem %s1014_s24, 768 }
  0x95   : > { %759 = vmatprep.subr.bf16.mxu1 %v1093_v4  ;;  %471 = vmatprep.subr.bf16.mxu0 %v875_v23  ;;  %p1016_p3 = scmp.lt.s32.totalorder %s1352_s29, %s1014_s24  ;;  %p1017_p7 = scmp.lt.s32.totalorder %s1015_s26, %s1009_s28 }
  0x96   : > { %p1012_p8 = pneg %p1011_p4 }
  0x97   : > { %p1018_p10 = por %p1017_p7, %p1016_p3 }
  0x98   : > { %472 = vmatpush1.bf16.msra.mxu0 %v877_v24  ;;  %760 = vmatpush3.bf16.msra.mxu1 %v878_v25 }
  0x99   : > { %473 = vmatprep.subr.bf16.mxu0 %v879_v26  ;;  %761 = vmatprep.subr.bf16.mxu1 %v1093_v4  ;;  %p1019_p13 = pnand %p1018_p10, %p1012_p8 }
  0x9c   : > { %474 = vmatpush1.bf16.msra.mxu0 %v881_v27  ;;  %762 = vmatpush3.bf16.msra.mxu1 %v882_v28 }
  0x9d   : > { %475 = vmatprep.subr.bf16.mxu0 %v883_v29  ;;  %763 = vmatprep.subr.bf16.mxu1 %v1093_v4 }
  0xa0   : > { %476 = vmatpush1.bf16.msra.mxu0 %v885_v31  ;;  %764 = vmatpush3.bf16.msra.mxu1 %v886_v32 }
  0xa1   : > { %477 = vmatprep.subr.bf16.mxu0 %v887_v33  ;;  %765 = vmatprep.subr.bf16.mxu1 %v1093_v4 }
  0xa4   : > { %478 = vmatpush1.bf16.msra.mxu0 %v889_v34  ;;  %766 = vmatpush3.bf16.msra.mxu1 %v890_v35 }
 0x113   : > { %v264_v7 = vpop.xlane.xlu0 %263 }
 0x114   : > { %v268_v8 = vmul.f32 0.0078125, %v264_v7 }
 0x116   : > { %v1333_v9 = vsub.f32 %v259_v0, %v268_v8 }
 0x117   : > { %v266_v10 = vpop.xlane.xlu0 %265 }
 0x118   : > { %v269_v11 = vmul.f32 0.0078125, %v266_v10  ;;  %v272_v12 = vmul.f32 %v1333_v9, %v1333_v9 }
 0x11a   : > { %v1337_v13 = vsub.f32 %v260_v1, %v269_v11  ;;  %274 = vadd.xlane.f32.xlu1 %v272_v12 }
 0x11c   : > { %v273_v14 = vmul.f32 %v1337_v13, %v1337_v13 }
 0x11e   : > { %276 = vadd.xlane.f32.xlu1 %v273_v14 }
 0x1a7   : > { %v275_v36 = vpop.xlane.xlu1 %274 }
 0x1a8   : > { %v278_v37 = vmul.f32 0.0078125, %v275_v36 }
 0x1aa   : > { %v280_v38 = vadd.f32 1e-05, %v278_v37 }
 0x1ab   : > { %v277_v39 = vpop.xlane.xlu1 %276 }
 0x1ac   : > { %891 = vrsqrt.f32 %v280_v38  ;;  %v279_v40 = vmul.f32 0.0078125, %v277_v39 }
 0x1ae   : > { %v281_v41 = vadd.f32 1e-05, %v279_v40 }
 0x1b0   : > { %893 = vrsqrt.f32 %v281_v41 }
 0x1b6   : > { %v892_v42 = vpop.eup %891 }
 0x1b7   : > { %v284_v43 = vmul.f32 %v892_v42, %v1333_v9 }
 0x1b9   : > { %v292_v47 = vmul.f32 %v702_v44, %v284_v43 }
 0x1ba   : > { %v894_v45 = vpop.eup %893 }
 0x1bb   : > { %v285_v46 = vmul.f32 %v894_v45, %v1337_v13  ;;  %v300_v50 = vadd.f32 %v703_v48, %v292_v47 }
 0x1bd   : > { %v293_v49 = vmul.f32 %v702_v44, %v285_v46 }
 0x1bf   : > { %v301_v51 = vadd.f32 %v703_v48, %v293_v49 }
 0x1c1   : > { %v302_v52 = vpack.c.bf16 %v301_v51, %v300_v50 }
 0x1c3   : > { %496 = vmatmul.mubr.bf16.vlgmr.msra.gmra.mrb[0].mxu0 %v302_v52  ;;  %768 = vmatmul.mubr.bf16.vlgmr.msra.gmra.mrb[0].mxu1 %v302_v52 }
 0x296   : > { %v497_v53 = vpop.f32.mrb[0].mxu0  ;;  %v540_v54 = vpop.f32.mrb[0].mxu1 }
 0x297   : > { %v739_v55 = vpack.c.bf16 %v540_v54, %v540_v54  ;;  %v499_v56 = vpop.f32.mrb[1].mxu0  ;;  %v769_v57 = vpop.f32.mrb[1].mxu1 }
 0x298   : > { %v738_v58 = vpack.c.bf16 %v499_v56, %v497_v53  ;;  %v501_v59 = vpop.f32.mrb[2].mxu0  ;;  %v543_v60 = vpop.f32.mrb[2].mxu1 }
 0x299   : > { %568 = vst [vmem:[%s255_s23 + $0x8] sm:$0xf] %v739_v55  ;;  %v741_v61 = vpack.c.bf16 %v543_v60, %v543_v60  ;;  %v503_v62 = vpop.f32.mrb[3].mxu0  ;;  %v770_v63 = vpop.f32.mrb[3].mxu1 }
 0x29a   : > { %567 = vst [vmem:[%s255_s23] sm:$0xff] %v738_v58  ;;  %v740_v0 = vpack.c.bf16 %v503_v62, %v501_v59 }
 0x29b   : > { %570 = vst [vmem:[%s255_s23 + $0x14] sm:$0xf] %v741_v61 }
 0x29c   : > { %569 = vst [vmem:[%s255_s23 + $0xc] sm:$0xff] %v740_v0 }
 0x29d   : > { %1022 = shalt.err (!%p1019_p13)
}
 0x29e   : > { %s1023_s5 = scalar_lea.hbm %s1357_s7, 384  ;;  %s1027_s11 = scalar_lea.hbm %s1405_s4, 768 }
 0x29f   : > { %p1024_p0 = scmp.ne.s32.totalorder %s1357_s7, %s1023_s5  ;;  %p1028_p11 = scmp.lt.u32.totalorder %s1357_s7, %s1405_s4 }
 0x2a0   : > { %p1029_p12 = scmp.lt.u32.totalorder %s1027_s11, %s1023_s5  ;;  %p1031_p1 = scmp.lt.u32.totalorder %s1023_s5, %s1357_s7 }
 0x2a1   : > { %p1025_p5 = pnand %p1024_p0, %p1267_p6 }
 0x2a2   : > { %p1030_p2 = por %p1029_p12, %p1028_p11 }
 0x2a3   : > { %p1026_p9 = pneg %p1025_p5 }
 0x2a4   : > { %p1032_p4 = por %p1031_p1, %p1030_p2 }
 0x2a6   : > { %p1033_p8 = pnand %p1032_p4, %p1026_p9 }
 0x2a8   : > { %1036 = shalt.err (!%p1033_p8)
}
 0x2a9   : > { %s1097_s23 = smov 192   ;;  %s1098_s6 = smov 12  }
 0x2aa   : > { %787 = dma.vmem_to_hbm [thread:$0]  (%p1267_p6), %s1352_s29, 384, %s1357_s7, %s572_s20, %s1097_s23, %s1097_s23, %s1098_s6  }
 0x2ab PF: > { %s601_s19 = sand.u32 1, %s1071_s15   ;;  %p1423_p3 = scmp.ne.s32.totalorder %s1410_s22, 0 }
 0x2ac   : > { %p1424_p7 = scmp.ge.s32.totalorder %s1083_s18, 2  ;;  %s602_s27 = scalar_lea.sflag [#allocation4], %s601_s19 }
 0x2ae   : > { %p804_p10 = pnand %p1424_p7, %p1423_p3 }
 0x2b0   : > { %1066 = dma.done.wait (!%p804_p10), %s602_s27, 384  }
 0x2b1   : > { %1068 = vsyncadd (!%p804_p10), %s602_s27, 4294966912  ;;  %p19_p13 = scmp.ge.s32.totalorder %s1253_s25, 4   ;;  %s1425_s15 = smov %s1075_s16 }
 0x2b2   : > { %s1426_s16 = smov %s1079_s17  ;;  %s1427_s17 = smov %s1263_s13 }
 0x2b3   : > { %s1428_s18 = smov %s1253_s25  ;;  %21 = sbr.rel (!%p19_p13) target bundleno = 7 (0x7), region = 93 }
 0x2ba   :  { %607 = vsyncpa [#allocation3], 1 }
 0x2bb   :  { %609 = vsyncpa [#allocation3 + $0x1], 1 }
 0x2bc   :  { %610 = vsyncpa [#allocation6], 1 }
 0x2bd   :  { %611 = vsyncpa [#allocation9], 1 }
 0x2be   :  { %612 = vsyncpa [#allocation4], 1 }
 0x2bf   :  { %614 = vsyncpa [#allocation4 + $0x1], 1 }

// kernel: block_forward.4
= control target key start
LH: loop header
LB: loop body
LE: loop exit
PB: predicated region body
PF: predicated region fallthrough
CT: control target
= control target key end

     0   :  { %s2101_s0 = inlined_call_operand.hbm [shape: bf16[2,16,384], index: 0, kind: input, shape index: {}]   ;;  %s2102_s1 = inlined_call_operand.hbm [shape: f32[2,16,128], index: 1, kind: input, shape index: {}]   ;;  %s2103_s2 = inlined_call_operand.hbm [shape: bf16[128,128], index: 2, kind: input, shape index: {}]   ;;  %s2104_s3 = inlined_call_operand.hbm [shape: f32[1,128], index: 3, kind: input, shape index: {}]   ;;  %s2105_s4 = inlined_call_operand.hbm [shape: f32[2,16,128], index: 4, kind: output, shape index: {}]  }
   0x1   :  { %2109 = sst [smem:[#allocation16_spill]] %s2101_s0 }
   0x2   :  { %2110 = sst [smem:[#allocation17_spill]] %s2103_s2 }
   0x3   :  { %9 = vsyncpa [#allocation3], 0 }
   0x4   :  { %11 = vsyncpa [#allocation3 + $0x1], 0 }
   0x5   :  { %12 = vsyncpa [#allocation6], 0 }
   0x6   :  { %14 = vsyncpa [#allocation6 + $0x1], 0 }
   0x7   :  { %15 = vsyncpa [#allocation9], 0 }
   0x8   :  { %16 = vsyncpa [#allocation4], 0 }
   0x9   :  { %18 = vsyncpa [#allocation4 + $0x1], 0  ;;  %s1697_s15 = smov 0   ;;  %s1699_s16 = smov 0  }
   0xa   :  { %s1701_s17 = smov 0   ;;  %s1703_s18 = smov 0  }
   0xb LB: > { %s1718_s19 = sadd.s32 4294967295, %s1652_s18   ;;  %s1173_s20 = sadd.s32 4294967294, %s1652_s18   ;;  %s1652_s18 = sphi %s1703_s18, %s2131_s18   ;;  %s1648_s17 = sphi %s1701_s17, %s2130_s17   ;;  %s1644_s16 = sphi %s1699_s16, %s2129_s16   ;;  %s1640_s15 = sphi %s1697_s15, %s2128_s15  }
   0xc   : > { %p44_p0 = scmp.ne.s32.totalorder %s1644_s16, %s1640_s15  ;;  %p2106_p1 = scmp.eq.s32.totalorder %s1718_s19, 0 }
   0xd   : > { %p142_p3 = scmp.eq.s32.totalorder %s1173_s20, 1  ;;  %p1174_p5 = scmp.ge.s32.totalorder %s1652_s18, 1 }
   0xe   : > { %p1727_p4 = por %p2106_p1, %p44_p0  ;;  %p149_p7 = scmp.lt.s32.totalorder %s1652_s18, 3 }
   0xf   : > { %p1732_p6 = por %p142_p3, %p44_p0  ;;  %s1654_s24 = smov [#allocation7]  }
  0x10   : > { %s2111_s21 = scalar_select %p1727_p4, 1, 0 }
  0x11   : > { %s2112_s22 = scalar_select %p1732_p6, 1, 0 }
  0x12   : > { %p1737_p8 = pnand %p1174_p5, %p149_p7  ;;  %s161_s25 = sshll.u32 %s1654_s24, 4  ;;  %s1741_s25 = int_to_ptr.vmem [resolvable:$true] %s161_s25 }
  0x13   : > { %s1655_s27 = smov [#allocation8]   ;;  %s2115_s2 = sld [smem:[#allocation17_spill]] }
  0x14   : > { %p1343_p9 = pneg %p1737_p8  ;;  %s175_s28 = sshll.u32 %s1655_s27, 4  ;;  %s1752_s28 = int_to_ptr.vmem [resolvable:$true] %s175_s28 }
  0x16   : > { %p1748_p11 = pnand %p1343_p9, %p2106_p1 }
  0x18   : > { %p1460_p13 = pneg %p1748_p11 }
  0x19   : > { %s1458_s5 = scalar_lea.hbm %s2115_s2, 1024 }
  0x1a   : > { %p1459_p12 = scmp.ne.s32.totalorder %s2115_s2, %s1458_s5  ;;  %p1465_p5 = scmp.lt.u32.totalorder %s1458_s5, %s2115_s2 }
  0x1c   : > { %p1461_p0 = pnand %p1460_p13, %p1459_p12 }
  0x1e   : > { %p1462_p3 = pneg %p1461_p0 }
  0x20   : > { %p1467_p7 = pnand %p1465_p5, %p1462_p3 }
  0x22   : > { %1470 = shalt.err (!%p1467_p7)
}
  0x23   : > { %s1471_s10 = scalar_lea.vmem %s1741_s25, 1024  ;;  %p1479_p2 = scmp.lt.s32.totalorder %s1741_s25, %s1741_s25 }
  0x24   : > { %p1472_p9 = scmp.ne.s32.totalorder %s1741_s25, %s1471_s10  ;;  %p1480_p12 = scmp.lt.s32.totalorder %s1471_s10, %s1471_s10 }
  0x26   : > { %p1474_p10 = pnand %p1472_p9, %p1460_p13  ;;  %p1481_p0 = por %p1480_p12, %p1479_p2 }
  0x28   : > { %p1475_p1 = pneg %p1474_p10 }
  0x2a   : > { %p1482_p6 = pnand %p1481_p0, %p1475_p1 }
  0x2c   : > { %1485 = shalt.err (!%p1482_p6)
}
  0x2d   : > { %s1656_s11 = smov 64   ;;  %s1657_s12 = smov 4  }
  0x2e   : > { %1346 = dma.hbm_to_vmem [thread:$0]  (!%p1748_p11), %s2115_s2, 1024, %s1741_s25, [#allocation6], %s1656_s11, %s1656_s11, %s1657_s12  }
  0x2f   : > { %s1486_s27 = scalar_lea.hbm %s2104_s3, 16 }
  0x30   : > { %p1487_p2 = scmp.ne.s32.totalorder %s2104_s3, %s1486_s27  ;;  %p1493_p10 = scmp.lt.u32.totalorder %s1486_s27, %s2104_s3 }
  0x32   : > { %p1489_p1 = pnand %p1487_p2, %p1460_p13 }
  0x34   : > { %p1490_p6 = pneg %p1489_p1 }
  0x36   : > { %p1495_p3 = pnand %p1493_p10, %p1490_p6 }
  0x38   : > { %1498 = shalt.err (!%p1495_p3)
}
  0x39   : > { %s1499_s25 = scalar_lea.vmem %s1752_s28, 16  ;;  %s1506_s7 = scalar_lea.vmem %s1752_s28, 32 }
  0x3a   : > { %p1500_p5 = scmp.ne.s32.totalorder %s1752_s28, %s1499_s25  ;;  %p1507_p12 = scmp.lt.s32.totalorder %s1752_s28, %s1752_s28 }
  0x3b   : > { %p1508_p0 = scmp.lt.s32.totalorder %s1506_s7, %s1499_s25 }
  0x3c   : > { %p1502_p7 = pnand %p1500_p5, %p1460_p13 }
  0x3d   : > { %p1509_p2 = por %p1508_p0, %p1507_p12 }
  0x3e   : > { %p1503_p9 = pneg %p1502_p7 }
  0x40   : > { %p1510_p1 = pnand %p1509_p2, %p1503_p9 }
  0x42   : > { %1513 = shalt.err (!%p1510_p1)
}
  0x43   : > { %1349 = dma.hbm_to_vmem [thread:$0]  (!%p1748_p11), %s2104_s3, 16, %s1752_s28, [#allocation9]  }
  0x44   : > { %s1808_s10 = sadd.s32 1, %s1652_s18   ;;  %s31_s26 = sadd.s32 1, %s1648_s17 }
  0x45   : > { %s28_s11 = ssub.s32 %s1652_s18, %s1808_s10  ;;  %p38_p13 = scmp.ne.s32.totalorder %s1648_s17, %s1644_s16 }
  0x46   : > { %p29_p6 = scmp.eq.s32.totalorder %s28_s11, 0  ;;  %p39_p10 = scmp.eq.s32.totalorder %s1652_s18, 0 }
  0x47   : > { %p2116_p3 = scmp.eq.s32.totalorder %s1718_s19, 1  ;;  %p1363_p7 = scmp.lt.s32.totalorder %s1652_s18, 2 }
  0x48   : > { %s1824_s13 = scalar_select %p29_p6, %s1648_s17, %s31_s26  }
  0x49   : > { %p1818_p5 = por %p2116_p3, %p38_p13  ;;  %p40_p9 = por %p39_p10, %p38_p13 }
  0x4a   : > { %s1827_s14 = sand.u32 1, %s1648_s17   ;;  %s1327_s20 = smul.u32 384, %s1652_s18 }
  0x4b   : > { %s2117_s12 = scalar_select %p1818_p5, 1, 0 }
  0x4c   : > { %s1326_s28 = smul.u32 24, %s1827_s14  ;;  %p1831_p11 = pnand %p1363_p7, %p40_p9 }
  0x4d   : > { %s2119_s0 = sld [smem:[#allocation16_spill]]  ;;  %s207_s25 = sand.u32 1, %s1652_s18  }
  0x4e   : > { %s190_s5 = scalar_lea.vmem [#allocation2], %s1326_s28  ;;  %s187_s7 = scalar_lea.sflag [#allocation3], %s1827_s14 }
  0x4f   : > { %s197_s6 = sshll.u32 %s190_s5, 4  ;;  %p1516_p0 = pneg %p1831_p11  ;;  %s1840_s6 = int_to_ptr.vmem [resolvable:$true] %s197_s6 }
  0x53   : > { %s1838_s30 = scalar_lea.hbm %s2119_s0, %s1327_s20  ;;  %s1519_s11 = scalar_lea.hbm %s2119_s0, 768 }
  0x54   : > { %s1514_s8 = scalar_lea.hbm %s1838_s30, 384  ;;  %p1520_p13 = scmp.lt.u32.totalorder %s1838_s30, %s2119_s0 }
  0x55   : > { %p1515_p12 = scmp.ne.s32.totalorder %s1838_s30, %s1514_s8  ;;  %p1521_p6 = scmp.lt.u32.totalorder %s1519_s11, %s1514_s8 }
  0x56   : > { %p1523_p3 = scmp.lt.u32.totalorder %s1514_s8, %s1838_s30 }
  0x57   : > { %p1517_p2 = pnand %p1516_p0, %p1515_p12  ;;  %p1522_p10 = por %p1521_p6, %p1520_p13 }
  0x59   : > { %p1518_p1 = pneg %p1517_p2  ;;  %p1524_p7 = por %p1523_p3, %p1522_p10 }
  0x5b   : > { %p1525_p9 = pnand %p1524_p7, %p1518_p1 }
  0x5d   : > { %1528 = shalt.err (!%p1525_p9)
}
  0x5e   : > { %s1529_s28 = scalar_lea.vmem %s1840_s6, 384  ;;  %s1658_s29 = smov [#allocation2]  }
  0x5f   : > { %p1530_p12 = scmp.ne.s32.totalorder %s1840_s6, %s1529_s28  ;;  %s1534_s5 = sshll.u32 %s1658_s29, 4  ;;  %s1535_s5 = int_to_ptr.vmem [resolvable:$false] %s1534_s5 }
  0x60   : > { %s1536_s9 = scalar_lea.vmem %s1535_s5, 768  ;;  %p1537_p4 = scmp.lt.s32.totalorder %s1840_s6, %s1535_s5 }
  0x61   : > { %p1532_p2 = pnand %p1530_p12, %p1516_p0  ;;  %p1538_p13 = scmp.lt.s32.totalorder %s1536_s9, %s1529_s28 }
  0x63   : > { %p1533_p5 = pneg %p1532_p2  ;;  %p1539_p6 = por %p1538_p13, %p1537_p4 }
  0x65   : > { %p1540_p10 = pnand %p1539_p6, %p1533_p5 }
  0x67   : > { %1543 = shalt.err (!%p1540_p10)
}
  0x68   : > { %s1659_s8 = smov 192   ;;  %s1660_s26 = smov 12  }
  0x69   : > { %1353 = dma.hbm_to_vmem [thread:$0]  (!%p1831_p11), %s1838_s30, 384, %s1840_s6, %s187_s7, %s1659_s8, %s1659_s8, %s1660_s26  }
  0x6a   : > { %s1179_s11 = sshll.u32 %s1827_s14, 4  ;;  %s1216_s20 = sshll.u32 %s1652_s18, 8 }
  0x6b   : > { %s1876_s29 = scalar_lea.hbm %s2102_s1, %s1216_s20  ;;  %s211_s5 = scalar_lea.vmem [#allocation5], %s1179_s11 }
  0x6c   : > { %s218_s9 = sshll.u32 %s211_s5, 4  ;;  %s1882_s0 = scalar_lea.sflag [#allocation6], %s207_s25  ;;  %s1878_s9 = int_to_ptr.vmem [resolvable:$true] %s218_s9 }
  0x6d   : > { %s1544_s2 = scalar_lea.hbm %s1876_s29, 256  ;;  %s1549_s6 = scalar_lea.hbm %s2102_s1, 512 }
  0x6e   : > { %p1545_p4 = scmp.ne.s32.totalorder %s1876_s29, %s1544_s2  ;;  %p1550_p3 = scmp.lt.u32.totalorder %s1876_s29, %s2102_s1 }
  0x6f   : > { %p1551_p7 = scmp.lt.u32.totalorder %s1549_s6, %s1544_s2  ;;  %p1553_p12 = scmp.lt.u32.totalorder %s1544_s2, %s1876_s29 }
  0x70   : > { %p1547_p5 = pnand %p1545_p4, %p1516_p0 }
  0x71   : > { %p1552_p9 = por %p1551_p7, %p1550_p3 }
  0x72   : > { %p1548_p1 = pneg %p1547_p5 }
  0x73   : > { %p1554_p2 = por %p1553_p12, %p1552_p9 }
  0x75   : > { %p1555_p13 = pnand %p1554_p2, %p1548_p1 }
  0x77   : > { %1558 = shalt.err (!%p1555_p13)
}
  0x78   : > { %s1559_s25 = scalar_lea.vmem %s1878_s9, 256  ;;  %s1661_s26 = smov [#allocation5]  }
  0x79   : > { %p1560_p6 = scmp.ne.s32.totalorder %s1878_s9, %s1559_s25  ;;  %s1564_s11 = sshll.u32 %s1661_s26, 4  ;;  %s1565_s11 = int_to_ptr.vmem [resolvable:$false] %s1564_s11 }
  0x7a   : > { %s1566_s20 = scalar_lea.vmem %s1565_s11, 512  ;;  %p1567_p5 = scmp.lt.s32.totalorder %s1878_s9, %s1565_s11 }
  0x7b   : > { %p1562_p10 = pnand %p1560_p6, %p1516_p0  ;;  %p1568_p3 = scmp.lt.s32.totalorder %s1566_s20, %s1559_s25 }
  0x7d   : > { %p1563_p4 = pneg %p1562_p10  ;;  %p1569_p7 = por %p1568_p3, %p1567_p5 }
  0x7f   : > { %p1570_p9 = pnand %p1569_p7, %p1563_p4 }
  0x81   : > { %1573 = shalt.err (!%p1570_p9)
}
  0x82   : > { %s1662_s2 = smov 128   ;;  %s1663_s27 = smov 8  }
  0x83   : > { %1356 = dma.hbm_to_vmem [thread:$0]  (!%p1831_p11), %s1876_s29, 256, %s1878_s9, %s1882_s0, %s1662_s2, %s1662_s2, %s1663_s27  }
  0x84   : > { %230 = sbr.rel (%p1737_p8) target bundleno = 2974 (0xb9e), region = 36  ;;  %s1911_s28 = sand.u32 (!%p1737_p8), 1, %s1644_s16  }
  0x85   : > { %s1328_s5 = smul.u32 (!%p1737_p8), 24, %s1911_s28  ;;  %s233_s14 = scalar_lea.sflag (!%p1737_p8), [#allocation3], %s1911_s28 }
  0x86   : > { %p2120_p0 = scmp.ne.s32.totalorder (!%p1737_p8), %s2111_s21, 0 }
  0x87   : > { %s1915_s30 = scalar_lea.vmem (!%p1737_p8), [#allocation2], %s1328_s5 }
  0x8b   : > { %1619 = dma.done.wait (%p2120_p0), %s233_s14, 384  }
  0x8c   : > { %1621 = vsyncadd (%p2120_p0), %s233_s14, 4294966912  ;;  %s241_s0 = sand.u32 1, %s1718_s19   ;;  %s1183_s23 = sshll.u32 %s1911_s28, 4 }
  0x8d   : > { %s242_s24 = scalar_lea.sflag [#allocation6], %s241_s0  ;;  %s1925_s29 = scalar_lea.vmem [#allocation5], %s1183_s23 }
  0x8e   : > { %1623 = dma.done.wait (%p2120_p0), %s242_s24, 256  }
  0x8f   : > { %1625 = vsyncadd (%p2120_p0), %s242_s24, 4294967040  ;;  %p2121_p8 = scmp.eq.s32.totalorder %s1718_s19, 0 }
  0x91   : > { %1627 = dma.done.wait (%p2121_p8), [#allocation6], 1024   ;;  %p2122_p11 = pmov %p2121_p8 }
  0x92   : > { %p2123_p1 = pmov %p2121_p8 }
  0x93   : > { %1629 = vsyncadd (%p2122_p11), [#allocation6], 4294966272 }
  0x94   : > { %1631 = dma.done.wait (%p2123_p1), [#allocation9], 16   ;;  %p2124_p12 = pmov %p2123_p1 }
  0x95   : > { %v1664_v0 = vmov 0.0   ;;  %vm1665_vm0 = vmmov 0   ;;  %vm296_vm1 = vcmask 261120   ;;  %v1946_v1 = vld [vmem:[%s1915_s30 + $0x4] ss:$12 sps:$4 sm:$0xff]   ;;  %vm344_vm2 = vcmask 130048  }
  0x96   : > { %1633 = vsyncadd (%p2124_p12), [#allocation9], 4294967280  ;;  %1246 = vmatprep.subr.bf16.mxu0 %v1664_v0  ;;  %1248 = vmatprep.mubr.msk.bf16.mxu0 %vm1665_vm0, %v1664_v0  ;;  %v301_v2 = vsel %vm296_vm1, %v1946_v1, 0  ;;  %v1951_v3 = vld [vmem:[%s1915_s30] ss:$12 sps:$4 sm:$0xff]   ;;  %s1666_s21 = smov 96  }
  0x97   : > { %1252 = vmatprep.subr.bf16.mxu1 %v1664_v0  ;;  %1254 = vmatprep.mubr.msk.bf16.mxu1 %vm1665_vm0, %v1664_v0  ;;  %v1965_v20 = vld [vmem:[%s1915_s30 + $0x8] ss:$12 sps:$4 sm:$0xff]   ;;  %s1667_s9 = smov 64   ;;  %v1419_v63 = vld [vmem:[#allocation7 + $0x8] sm:$0xff]   ;;  %s1668_s6 = smov 32  }
  0x98   : > { %1247 = vmatpush3.bf16.xpose.msra.mxu0 %v301_v2  ;;  %1253 = vmatpush3.bf16.msra.mxu1 %v1965_v20  ;;  %v1420_v52 = vld [vmem:[#allocation7 + $0x10] sm:$0xff]   ;;  %v1421_v53 = vld [vmem:[#allocation7 + $0x18] sm:$0xff]   ;;  %v1418_v61 = vld [vmem:[#allocation7] sm:$0xff]   ;;  %s282_s7 = scalar_lea.vmem [#allocation10], %s1183_s23  ;;  %s1217_s25 = sshll.u32 %s1718_s19, 8 }
  0x99   : > { %1264 = vmatprep.subr.bf16.mxu0 %v1664_v0  ;;  %1258 = vmatprep.subr.bf16.mxu1 %v1664_v0  ;;  %s1058_s8 = sshll.u32 %s282_s7, 4  ;;  %s2057_s20 = scalar_lea.hbm %s2105_s4, %s1217_s25  ;;  %s2052_s8 = int_to_ptr.vmem [resolvable:$true] %s1058_s8 }
  0x9a   : > { %s1045_s2 = scalar_lea.sflag [#allocation4], %s1911_s28  ;;  %s1574_s27 = scalar_lea.vmem %s2052_s8, 256 }
  0x9b   : > { %p1575_p2 = scmp.ne.s32.totalorder %s2052_s8, %s1574_s27  ;;  %p2125_p13 = scmp.ne.s32.totalorder %s2117_s12, 0 }
  0x9c   : > { %s1669_s19 = smov [#allocation10]  }
  0x9d   : > { %p1576_p6 = pnand %p1575_p2, %p2125_p13  ;;  %s1578_s5 = sshll.u32 %s1669_s19, 4  ;;  %s1579_s5 = int_to_ptr.vmem [resolvable:$false] %s1578_s5 }
  0x9e   : > { %s1580_s14 = scalar_lea.vmem %s1579_s5, 512  ;;  %p1581_p4 = scmp.lt.s32.totalorder %s2052_s8, %s1579_s5 }
  0x9f   : > { %1249 = vmatmul.mubr.msk.bf16.vlgmr.msra.gmra.mrb[0].mxu0 %vm296_vm1, %v1951_v3  ;;  %p1577_p10 = pneg %p1576_p6  ;;  %p1582_p5 = scmp.lt.s32.totalorder %s1580_s14, %s1574_s27 }
  0xa0   : > { %1266 = vmatprep.mubr.msk.bf16.mxu0 %vm1665_vm0, %v1664_v0 }
  0xa1   : > { %p1583_p3 = por %p1582_p5, %p1581_p4 }
  0xa3   : > { %p1584_p7 = pnand %p1583_p3, %p1577_p10 }
 0x172   : > { %v337_v4 = vpop.f32.mrb[0].mxu0 }
 0x173   : > { %v1250_v5 = vpop.f32.mrb[1].mxu0  ;;  %v345_v6 = vsel %vm344_vm2, %v337_v4, -inf }
 0x174   : > { %346 = vmax.xlane.f32.xlu0 %v345_v6  ;;  %v340_v7 = vpop.f32.mrb[2].mxu0 }
 0x175   : > { %v1251_v8 = vpop.f32.mrb[3].mxu0  ;;  %v348_v9 = vsel %vm344_vm2, %v340_v7, -inf }
 0x178   : > { %349 = vmax.xlane.f32.xlu0 %v348_v9 }
 0x18e   : > { %425 = vrot.lane.b32.xlu0 %v1946_v1, %s1666_s21 }
 0x201   : > { %v347_v10 = vpop.xlane.xlu0 %346 }
 0x202   : > { %v351_v11 = vsub.f32 %v337_v4, %v347_v10 }
 0x204   : > { %v353_v12 = vmul.f32 1.442695, %v351_v11 }
 0x205   : > { %v350_v13 = vpop.xlane.xlu0 %349 }
 0x206   : > { %1426 = vpow2.f32 %v353_v12  ;;  %v352_v14 = vsub.f32 %v340_v7, %v350_v13 }
 0x208   : > { %v355_v15 = vmul.f32 1.442695, %v352_v14 }
 0x209   : > { %v426_v25 = vpop.permute.xlu0 %425 }
 0x20a   : > { %1428 = vpow2.f32 %v355_v15  ;;  %v431_v28 = vsel %vm296_vm1, %v426_v25, 0 }
 0x210   : > { %v1427_v16 = vpop.eup %1426 }
 0x211   : > { %v357_v17 = vsel %vm344_vm2, %v1427_v16, 0.0 }
 0x212   : > { %358 = vadd.xlane.f32.xlu1 %v357_v17 }
 0x214   : > { %v1429_v18 = vpop.eup %1428 }
 0x215   : > { %v360_v19 = vsel %vm344_vm2, %v1429_v18, 0.0 }
 0x216   : > { %361 = vadd.xlane.f32.xlu1 %v360_v19 }
 0x227   : > { %423 = vrot.lane.b32.xlu1 %v1951_v3, %s1666_s21 }
 0x29f   : > { %v359_v21 = vpop.xlane.xlu1 %358 }
 0x2a0   : > { %1430 = vrcp.f32 %v359_v21 }
 0x2a3   : > { %v362_v22 = vpop.xlane.xlu1 %361 }
 0x2a4   : > { %1432 = vrcp.f32 %v362_v22 }
 0x2a7   : > { %v424_v30 = vpop.permute.xlu1 %423 }
 0x2aa   : > { %v1431_v23 = vpop.eup %1430 }
 0x2ab   : > { %v365_v26 = vmul.f32 %v1431_v23, %v1427_v16 }
 0x2ae   : > { %v1433_v24 = vpop.eup %1432 }
 0x2af   : > { %v366_v27 = vmul.f32 %v1433_v24, %v1429_v18 }
 0x2b1   : > { %v367_v29 = vpack.c.bf16 %v366_v27, %v365_v26 }
 0x2b3   : > { %1255 = vmatmul.mubr.msk.bf16.vlgmr.msra.gmra.mrb[0].mxu1 %vm344_vm2, %v367_v29 }
 0x2b4   : > { %1259 = vmatpush3.bf16.xpose.msra.mxu1 %v431_v28  ;;  %1260 = vmatprep.mubr.msk.bf16.mxu1 %vm1665_vm0, %v1664_v0 }
 0x2b5   : > { %1270 = vmatprep.subr.bf16.mxu1 %v1664_v0 }
 0x2bb   : > { %1261 = vmatmul.mubr.msk.bf16.vlgmr.msra.gmra.mrb[4].mxu1 %vm296_vm1, %v424_v30 }
 0x2bc   : > { %1274 = vmatprep.mubr.msk.bf16.mxu1 %vm1665_vm0, %v1664_v0  ;;  %1271 = vmatpush3.bf16.msra.mxu1 %v1420_v52 }
 0x2bd   : > { %1272 = vmatprep.subr.bf16.mxu1 %v1664_v0 }
 0x2c0   : > { %1273 = vmatpush3.bf16.msra.mxu1 %v1421_v53 }
 0x2c1   : > { %1286 = vmatprep.subr.bf16.mxu1 %v1664_v0 }
 0x386   : > { %v411_v31 = vpop.f32.mrb[0].mxu1 }
 0x387   : > { %v1256_v32 = vpop.f32.mrb[1].mxu1 }
 0x388   : > { %v414_v33 = vpop.f32.mrb[2].mxu1 }
 0x389   : > { %v418_v34 = vpack.c.bf16 %v414_v33, %v411_v31  ;;  %v1257_v35 = vpop.f32.mrb[3].mxu1 }
 0x38e   : > { %v467_v36 = vpop.f32.mrb[4].mxu1 }
 0x38f   : > { %v1262_v37 = vpop.f32.mrb[5].mxu1  ;;  %v474_v38 = vsel %vm344_vm2, %v467_v36, -inf }
 0x390   : > { %475 = vmax.xlane.f32.xlu1 %v474_v38  ;;  %v470_v39 = vpop.f32.mrb[6].mxu1 }
 0x391   : > { %v1263_v40 = vpop.f32.mrb[7].mxu1  ;;  %v477_v41 = vsel %vm344_vm2, %v470_v39, -inf }
 0x392   : > { %478 = vmax.xlane.f32.xlu0 %v477_v41 }
 0x41d   : > { %v476_v42 = vpop.xlane.xlu1 %475 }
 0x41e   : > { %v480_v43 = vsub.f32 %v467_v36, %v476_v42 }
 0x41f   : > { %v479_v44 = vpop.xlane.xlu0 %478 }
 0x420   : > { %v482_v45 = vmul.f32 1.442695, %v480_v43  ;;  %v481_v46 = vsub.f32 %v470_v39, %v479_v44 }
 0x422   : > { %1434 = vpow2.f32 %v482_v45  ;;  %v484_v47 = vmul.f32 1.442695, %v481_v46 }
 0x424   : > { %1436 = vpow2.f32 %v484_v47 }
 0x42c   : > { %v1435_v48 = vpop.eup %1434 }
 0x42d   : > { %v486_v49 = vsel %vm344_vm2, %v1435_v48, 0.0 }
 0x42e   : > { %v1437_v50 = vpop.eup %1436  ;;  %487 = vadd.xlane.f32.xlu0 %v486_v49 }
 0x42f   : > { %v489_v51 = vsel %vm344_vm2, %v1437_v50, 0.0 }
 0x430   : > { %490 = vadd.xlane.f32.xlu1 %v489_v51 }
 0x441   : > { %663 = vrot.lane.b32.xlu1 %v1946_v1, %s1667_s9 }
 0x444   : > { %497 = vrot.lane.b32.xlu0 %v1965_v20, %s1666_s21 }
 0x445   : > { %661 = vrot.lane.b32.xlu1 %v1951_v3, %s1667_s9 }
 0x4bb   : > { %v488_v54 = vpop.xlane.xlu0 %487 }
 0x4bc   : > { %1438 = vrcp.f32 %v488_v54 }
 0x4bd   : > { %v491_v55 = vpop.xlane.xlu1 %490 }
 0x4be   : > { %1440 = vrcp.f32 %v491_v55 }
 0x4bf   : > { %v498_v56 = vpop.permute.xlu0 %497 }
 0x4c0   : > { %1265 = vmatpush3.bf16.msra.mxu0 %v498_v56 }
 0x4c1   : > { %1278 = vmatprep.subr.bf16.mxu0 %v1664_v0  ;;  %v664_v4 = vpop.permute.xlu1 %663 }
 0x4c2   : > { %v669_v8 = vsel %vm296_vm1, %v664_v4, 0 }
 0x4c5   : > { %v662_v13 = vpop.permute.xlu1 %661 }
 0x4c6   : > { %v1439_v57 = vpop.eup %1438 }
 0x4c7   : > { %v494_v59 = vmul.f32 %v1439_v57, %v1435_v48  ;;  %v1423_v48 = vld [vmem:[#allocation7 + $0x28] sm:$0xff]  }
 0x4c8   : > { %v1441_v58 = vpop.eup %1440 }
 0x4c9   : > { %v495_v60 = vmul.f32 %v1441_v58, %v1437_v50 }
 0x4cb   : > { %v496_v62 = vpack.c.bf16 %v495_v60, %v494_v59 }
 0x4cd   : > { %1267 = vmatmul.mubr.msk.bf16.vlgmr.msra.gmra.mrb[4].mxu0 %vm344_vm2, %v496_v62 }
 0x4ce   : > { %1279 = vmatpush3.bf16.msra.mxu0 %v1418_v61  ;;  %1282 = vmatprep.mubr.msk.bf16.mxu0 %vm1665_vm0, %v1664_v0 }
 0x4cf   : > { %1280 = vmatprep.subr.bf16.mxu0 %v1664_v0 }
 0x4d2   : > { %1281 = vmatpush3.bf16.msra.mxu0 %v1419_v63 }
 0x4d3   : > { %1292 = vmatprep.subr.bf16.mxu0 %v1664_v0 }
 0x4d5   : > { %1283 = vmatmul.mubr.msk.bf16.vlgmr.msra.gmra.mrb[8].mxu0 %vm296_vm1, %v418_v34 }
 0x4d6   : > { %1294 = vmatprep.mubr.msk.bf16.mxu0 %vm1665_vm0, %v1664_v0 }
 0x5a0   : > { %v537_v2 = vpop.f32.mrb[4].mxu0 }
 0x5a1   : > { %v1268_v5 = vpop.f32.mrb[5].mxu0 }
 0x5a2   : > { %v540_v6 = vpop.f32.mrb[6].mxu0 }
 0x5a3   : > { %v544_v7 = vpack.c.bf16 %v540_v6, %v537_v2  ;;  %v1269_v9 = vpop.f32.mrb[7].mxu0 }
 0x5a4   : > { %v1424_v9 = vld [vmem:[#allocation7 + $0x30] sm:$0xff]  }
 0x5a5   : > { %1275 = vmatmul.mubr.msk.bf16.vlgmr.msra.gmra.mrb[8].mxu1 %vm296_vm1, %v544_v7 }
 0x5a6   : > { %1287 = vmatpush3.bf16.xpose.msra.mxu1 %v669_v8  ;;  %1288 = vmatprep.mubr.msk.bf16.mxu1 %vm1665_vm0, %v1664_v0 }
 0x5a7   : > { %1298 = vmatprep.subr.bf16.mxu1 %v1664_v0 }
 0x5a8   : > { %v654_v10 = vpop.f32.mrb[8].mxu0 }
 0x5a9   : > { %v1284_v11 = vpop.f32.mrb[9].mxu0 }
 0x5aa   : > { %v657_v12 = vpop.f32.mrb[10].mxu0 }
 0x5ab   : > { %v1285_v14 = vpop.f32.mrb[11].mxu0 }
 0x5ad   : > { %1289 = vmatmul.mubr.msk.bf16.vlgmr.msra.gmra.mrb[12].mxu1 %vm296_vm1, %v662_v13 }
 0x5ae   : > { %1302 = vmatprep.mubr.msk.bf16.mxu1 %vm1665_vm0, %v1664_v0 }
 0x678   : > { %v598_v15 = vpop.f32.mrb[8].mxu1 }
 0x679   : > { %v2008_v16 = vadd.f32 %v654_v10, %v598_v15  ;;  %v1276_v17 = vpop.f32.mrb[9].mxu1 }
 0x67a   : > { %v601_v18 = vpop.f32.mrb[10].mxu1 }
 0x67b   : > { %v2010_v19 = vadd.f32 %v657_v12, %v601_v18  ;;  %v1277_v21 = vpop.f32.mrb[11].mxu1 }
 0x680   : > { %v705_v22 = vpop.f32.mrb[12].mxu1 }
 0x681   : > { %v1290_v23 = vpop.f32.mrb[13].mxu1  ;;  %v712_v24 = vsel %vm344_vm2, %v705_v22, -inf }
 0x682   : > { %713 = vmax.xlane.f32.xlu1 %v712_v24  ;;  %v708_v25 = vpop.f32.mrb[14].mxu1 }
 0x683   : > { %v1291_v26 = vpop.f32.mrb[15].mxu1  ;;  %v715_v27 = vsel %vm344_vm2, %v708_v25, -inf }
 0x684   : > { %716 = vmax.xlane.f32.xlu0 %v715_v27 }
 0x693   : > { %735 = vrot.lane.b32.xlu1 %v1965_v20, %s1667_s9 }
 0x697   : > { %845 = vrot.lane.b32.xlu1 %v1951_v3, %s1668_s6  ;;  %v1422_v3 = vld [vmem:[#allocation7 + $0x20] sm:$0xff]  }
 0x698   : > { %1299 = vmatpush3.bf16.msra.mxu1 %v1422_v3 }
 0x699   : > { %1300 = vmatprep.subr.bf16.mxu1 %v1664_v0 }
 0x69c   : > { %1301 = vmatpush3.bf16.msra.mxu1 %v1423_v48 }
 0x69d   : > { %1312 = vmatprep.subr.bf16.mxu1 %v1664_v0 }
 0x70f   : > { %v714_v28 = vpop.xlane.xlu1 %713 }
 0x710   : > { %v718_v29 = vsub.f32 %v705_v22, %v714_v28 }
 0x711   : > { %v717_v30 = vpop.xlane.xlu0 %716 }
 0x712   : > { %v720_v31 = vmul.f32 1.442695, %v718_v29  ;;  %v719_v32 = vsub.f32 %v708_v25, %v717_v30  ;;  %v1210_v30 = vld [vmem:[#allocation8] ss:$0 sm:$0xff] }
 0x713   : > { %v736_v38 = vpop.permute.xlu1 %735 }
 0x714   : > { %1442 = vpow2.f32 %v720_v31  ;;  %v722_v33 = vmul.f32 1.442695, %v719_v32  ;;  %1293 = vmatpush3.bf16.msra.mxu0 %v736_v38  ;;  %v1039_v38 = vld [vmem:[%s1925_s29 + $0x8] sm:$0xff] }
 0x715   : > { %1306 = vmatprep.subr.bf16.mxu0 %v1664_v0 }
 0x716   : > { %1444 = vpow2.f32 %v722_v33  ;;  %v1038_v33 = vld [vmem:[%s1925_s29] sm:$0xff] }
 0x71e   : > { %v1443_v34 = vpop.eup %1442 }
 0x71f   : > { %v724_v35 = vsel %vm344_vm2, %v1443_v34, 0.0 }
 0x720   : > { %v1445_v36 = vpop.eup %1444  ;;  %725 = vadd.xlane.f32.xlu0 %v724_v35 }
 0x721   : > { %v727_v37 = vsel %vm344_vm2, %v1445_v36, 0.0 }
 0x724   : > { %728 = vadd.xlane.f32.xlu0 %v727_v37 }
 0x73a   : > { %847 = vrot.lane.b32.xlu0 %v1946_v1, %s1668_s6  ;;  %v846_v1 = vpop.permute.xlu1 %845 }
 0x7ad   : > { %v726_v39 = vpop.xlane.xlu0 %725 }
 0x7ae   : > { %1446 = vrcp.f32 %v726_v39 }
 0x7b1   : > { %v729_v40 = vpop.xlane.xlu0 %728 }
 0x7b2   : > { %1448 = vrcp.f32 %v729_v40 }
 0x7b5   : > { %v848_v43 = vpop.permute.xlu0 %847 }
 0x7b6   : > { %v853_v46 = vsel %vm296_vm1, %v848_v43, 0 }
 0x7b8   : > { %v1447_v41 = vpop.eup %1446 }
 0x7b9   : > { %v732_v44 = vmul.f32 %v1447_v41, %v1443_v34 }
 0x7bc   : > { %v1449_v42 = vpop.eup %1448 }
 0x7bd   : > { %v733_v45 = vmul.f32 %v1449_v42, %v1445_v36 }
 0x7bf   : > { %v734_v47 = vpack.c.bf16 %v733_v45, %v732_v44 }
 0x7c1   : > { %1295 = vmatmul.mubr.msk.bf16.vlgmr.msra.gmra.mrb[12].mxu0 %vm344_vm2, %v734_v47 }
 0x7c2   : > { %1307 = vmatpush3.bf16.xpose.msra.mxu0 %v853_v46  ;;  %1308 = vmatprep.mubr.msk.bf16.mxu0 %vm1665_vm0, %v1664_v0 }
 0x7c3   : > { %1318 = vmatprep.subr.bf16.mxu0 %v1664_v0 }
 0x7c9   : > { %1309 = vmatmul.mubr.msk.bf16.vlgmr.msra.gmra.mrb[16].mxu0 %vm296_vm1, %v846_v1 }
 0x7ca   : > { %1322 = vmatprep.mubr.msk.bf16.mxu0 %vm1665_vm0, %v1664_v0  ;;  %1319 = vmatpush3.bf16.msra.mxu0 %v1424_v9 }
 0x7cb   : > { %1320 = vmatprep.subr.bf16.mxu0 %v1664_v0 }
 0x894   : > { %v775_v49 = vpop.f32.mrb[12].mxu0 }
 0x895   : > { %v1296_v50 = vpop.f32.mrb[13].mxu0 }
 0x896   : > { %v778_v51 = vpop.f32.mrb[14].mxu0 }
 0x897   : > { %v782_v52 = vpack.c.bf16 %v778_v51, %v775_v49  ;;  %v1297_v53 = vpop.f32.mrb[15].mxu0 }
 0x899   : > { %1303 = vmatmul.mubr.msk.bf16.vlgmr.msra.gmra.mrb[16].mxu1 %vm296_vm1, %v782_v52 }
 0x89a   : > { %1314 = vmatprep.mubr.msk.bf16.mxu1 %vm1665_vm0, %v1664_v0 }
 0x89c   : > { %v889_v54 = vpop.f32.mrb[16].mxu0 }
 0x89d   : > { %v1310_v55 = vpop.f32.mrb[17].mxu0  ;;  %v896_v56 = vsel %vm344_vm2, %v889_v54, -inf }
 0x89e   : > { %897 = vmax.xlane.f32.xlu1 %v896_v56  ;;  %v892_v57 = vpop.f32.mrb[18].mxu0 }
 0x89f   : > { %v1311_v58 = vpop.f32.mrb[19].mxu0  ;;  %v899_v59 = vsel %vm344_vm2, %v892_v57, -inf }
 0x8a0   : > { %900 = vmax.xlane.f32.xlu0 %v899_v59 }
 0x92b   : > { %v898_v60 = vpop.xlane.xlu1 %897 }
 0x92c   : > { %v902_v61 = vsub.f32 %v889_v54, %v898_v60 }
 0x92d   : > { %v901_v62 = vpop.xlane.xlu0 %900 }
 0x92e   : > { %v904_v63 = vmul.f32 1.442695, %v902_v61  ;;  %v903_v2 = vsub.f32 %v892_v57, %v901_v62 }
 0x930   : > { %1450 = vpow2.f32 %v904_v63  ;;  %v906_v4 = vmul.f32 1.442695, %v903_v2 }
 0x932   : > { %1452 = vpow2.f32 %v906_v4 }
 0x93a   : > { %v1451_v5 = vpop.eup %1450 }
 0x93b   : > { %v908_v6 = vsel %vm344_vm2, %v1451_v5, 0.0 }
 0x93c   : > { %v1453_v7 = vpop.eup %1452  ;;  %909 = vadd.xlane.f32.xlu0 %v908_v6 }
 0x93d   : > { %v911_v8 = vsel %vm344_vm2, %v1453_v7, 0.0 }
 0x93e   : > { %912 = vadd.xlane.f32.xlu1 %v911_v8 }
 0x952   : > { %919 = vrot.lane.b32.xlu0 %v1965_v20, %s1668_s6 }
 0x96c   : > { %v836_v10 = vpop.f32.mrb[16].mxu1 }
 0x96d   : > { %v843_v11 = vadd.f32 %v836_v10, %v2008_v16  ;;  %v1304_v12 = vpop.f32.mrb[17].mxu1  ;;  %v1425_v16 = vld [vmem:[#allocation7 + $0x38] sm:$0xff]  }
 0x96e   : > { %v839_v13 = vpop.f32.mrb[18].mxu1  ;;  %1321 = vmatpush3.bf16.msra.mxu0 %v1425_v16 }
 0x96f   : > { %v844_v14 = vadd.f32 %v839_v13, %v2010_v19  ;;  %v1305_v15 = vpop.f32.mrb[19].mxu1 }
 0x9c9   : > { %v910_v17 = vpop.xlane.xlu0 %909 }
 0x9ca   : > { %1454 = vrcp.f32 %v910_v17 }
 0x9cb   : > { %v913_v18 = vpop.xlane.xlu1 %912 }
 0x9cc   : > { %1456 = vrcp.f32 %v913_v18 }
 0x9cd   : > { %v920_v21 = vpop.permute.xlu0 %919 }
 0x9ce   : > { %1313 = vmatpush3.bf16.msra.mxu1 %v920_v21 }
 0x9d4   : > { %v1455_v22 = vpop.eup %1454 }
 0x9d5   : > { %v916_v23 = vmul.f32 %v1455_v22, %v1451_v5 }
 0x9d6   : > { %v1457_v20 = vpop.eup %1456 }
 0x9d7   : > { %v917_v24 = vmul.f32 %v1457_v20, %v1453_v7 }
 0x9d9   : > { %v918_v0 = vpack.c.bf16 %v917_v24, %v916_v23 }
 0x9db   : > { %1315 = vmatmul.mubr.msk.bf16.vlgmr.msra.gmra.mrb[20].mxu1 %vm344_vm2, %v918_v0 }
 0xaae   : > { %v959_v25 = vpop.f32.mrb[20].mxu1 }
 0xaaf   : > { %v1316_v19 = vpop.f32.mrb[21].mxu1 }
 0xab0   : > { %v962_v26 = vpop.f32.mrb[22].mxu1 }
 0xab1   : > { %v966_v27 = vpack.c.bf16 %v962_v26, %v959_v25  ;;  %v1317_v28 = vpop.f32.mrb[23].mxu1 }
 0xab3   : > { %1323 = vmatmul.mubr.msk.bf16.vlgmr.msra.gmra.mrb[20].mxu0 %vm296_vm1, %v966_v27 }
 0xb86   : > { %v1020_v29 = vpop.f32.mrb[20].mxu0 }
 0xb87   : > { %v1027_v31 = vadd.f32 %v1020_v29, %v843_v11  ;;  %v1324_v32 = vpop.f32.mrb[21].mxu0 }
 0xb88   : > { %v1023_v34 = vpop.f32.mrb[22].mxu0 }
 0xb89   : > { %v1036_v35 = vadd.f32 %v1210_v30, %v1027_v31  ;;  %v1028_v36 = vadd.f32 %v1023_v34, %v844_v14  ;;  %v1325_v37 = vpop.f32.mrb[23].mxu0 }
 0xb8b   : > { %v1040_v3 = vadd.f32 %v1038_v33, %v1036_v35  ;;  %v1037_v39 = vadd.f32 %v1210_v30, %v1028_v36 }
 0xb8d   : > { %1042 = vst [vmem:[%s282_s7] sm:$0xff] %v1040_v3  ;;  %v1041_v40 = vadd.f32 %v1039_v38, %v1037_v39 }
 0xb8f   : > { %1043 = vst [vmem:[%s282_s7 + $0x8] sm:$0xff] %v1041_v40 }
 0xb90   : > { %1587 = shalt.err (!%p1584_p7)
}
 0xb91   : > { %s1588_s30 = scalar_lea.hbm %s2057_s20, 256  ;;  %s1592_s24 = scalar_lea.hbm %s2105_s4, 512 }
 0xb92   : > { %p1589_p9 = scmp.ne.s32.totalorder %s2057_s20, %s1588_s30  ;;  %p1593_p11 = scmp.lt.u32.totalorder %s2057_s20, %s2105_s4 }
 0xb93   : > { %p1594_p1 = scmp.lt.u32.totalorder %s1592_s24, %s1588_s30  ;;  %p1596_p2 = scmp.lt.u32.totalorder %s1588_s30, %s2057_s20 }
 0xb94   : > { %p1590_p0 = pnand %p1589_p9, %p2125_p13 }
 0xb95   : > { %p1595_p12 = por %p1594_p1, %p1593_p11 }
 0xb96   : > { %p1591_p8 = pneg %p1590_p0 }
 0xb97   : > { %p1597_p6 = por %p1596_p2, %p1595_p12 }
 0xb99   : > { %p1598_p10 = pnand %p1597_p6, %p1591_p8 }
 0xb9b   : > { %1601 = shalt.err (!%p1598_p10)
}
 0xb9c   : > { %s1670_s9 = smov 128   ;;  %s1671_s6 = smov 8  }
 0xb9d   : > { %1341 = dma.vmem_to_hbm [thread:$0]  (%p2125_p13), %s2052_s8, 256, %s2057_s20, %s1045_s2, %s1670_s9, %s1670_s9, %s1671_s6  }
 0xb9e PF: > { %s1073_s7 = sand.u32 1, %s1640_s15   ;;  %p2126_p4 = scmp.ne.s32.totalorder %s2112_s22, 0 }
 0xb9f   : > { %p2127_p5 = scmp.ge.s32.totalorder %s1652_s18, 2  ;;  %s1074_s25 = scalar_lea.sflag [#allocation4], %s1073_s7 }
 0xba1   : > { %p1358_p3 = pnand %p2127_p5, %p2126_p4 }
 0xba3   : > { %1635 = dma.done.wait (!%p1358_p3), %s1074_s25, 256  }
 0xba4   : > { %1637 = vsyncadd (!%p1358_p3), %s1074_s25, 4294967040  ;;  %p21_p7 = scmp.ge.s32.totalorder %s1808_s10, 4   ;;  %s2128_s15 = smov %s1644_s16 }
 0xba5   : > { %s2129_s16 = smov %s1648_s17  ;;  %s2130_s17 = smov %s1824_s13 }
 0xba6   : > { %s2131_s18 = smov %s1808_s10  ;;  %23 = sbr.rel (!%p21_p7) target bundleno = 11 (0xb), region = 102 }
 0xbad   :  { %1079 = vsyncpa [#allocation3], 1 }
 0xbae   :  { %1081 = vsyncpa [#allocation3 + $0x1], 1 }
 0xbaf   :  { %1082 = vsyncpa [#allocation6], 1 }
 0xbb0   :  { %1084 = vsyncpa [#allocation6 + $0x1], 1 }
 0xbb1   :  { %1085 = vsyncpa [#allocation9], 1 }
 0xbb2   :  { %1086 = vsyncpa [#allocation4], 1 }
 0xbb3   :  { %1088 = vsyncpa [#allocation4 + $0x1], 1 }

// kernel: block_forward.5
= control target key start
LH: loop header
LB: loop body
LE: loop exit
PB: predicated region body
PF: predicated region fallthrough
CT: control target
= control target key end

     0   :  { %s2300_s0 = inlined_call_operand.hbm [shape: f32[32,128], index: 0, kind: input, shape index: {}]   ;;  %s2301_s1 = inlined_call_operand.hbm [shape: f32[1,128], index: 1, kind: input, shape index: {}]   ;;  %s2302_s2 = inlined_call_operand.hbm [shape: f32[1,128], index: 2, kind: input, shape index: {}]   ;;  %s2303_s3 = inlined_call_operand.hbm [shape: bf16[128,512], index: 3, kind: input, shape index: {}]   ;;  %s2304_s4 = inlined_call_operand.hbm [shape: f32[1,512], index: 4, kind: input, shape index: {}]   ;;  %s2305_s5 = inlined_call_operand.hbm [shape: bf16[512,128], index: 5, kind: input, shape index: {}]   ;;  %s2306_s6 = inlined_call_operand.hbm [shape: f32[1,128], index: 6, kind: input, shape index: {}]   ;;  %s2307_s7 = inlined_call_operand.hbm [shape: f32[32,128], index: 7, kind: output, shape index: {}]  }
   0x1   :  { %2311 = sst [smem:[#allocation20_spill]] %s2301_s1 }
   0x2   :  { %12 = vsyncpa [#allocation3], 0 }
   0x3   :  { %14 = vsyncpa [#allocation3 + $0x1], 0 }
   0x4   :  { %15 = vsyncpa [#allocation6], 0 }
   0x5   :  { %16 = vsyncpa [#allocation9], 0 }
   0x6   :  { %17 = vsyncpa [#allocation12], 0 }
   0x7   :  { %18 = vsyncpa [#allocation4], 0 }
   0x8   :  { %20 = vsyncpa [#allocation4 + $0x1], 0  ;;  %s1950_s24 = smov 0   ;;  %s1952_s25 = smov 0  }
   0x9   :  { %s1954_s26 = smov 0   ;;  %s1956_s27 = smov 0  }
   0xa LB: > { %s1893_s28 = smov [#allocation5]   ;;  %s1971_s30 = sadd.s32 4294967295, %s1891_s27   ;;  %s1891_s27 = sphi %s1956_s27, %s2335_s27   ;;  %s1887_s26 = sphi %s1954_s26, %s2334_s26   ;;  %s1883_s25 = sphi %s1952_s25, %s2333_s25   ;;  %s1879_s24 = sphi %s1950_s24, %s2332_s24  }
   0xb   : > { %s222_s29 = sshll.u32 %s1893_s28, 4  ;;  %p1261_p0 = scmp.ge.s32.totalorder %s1891_s27, 1  ;;  %s1976_s29 = int_to_ptr.vmem [resolvable:$true] %s222_s29 }
   0xc   : > { %p2308_p1 = scmp.eq.s32.totalorder %s1971_s30, 0  ;;  %p209_p2 = scmp.lt.s32.totalorder %s1891_s27, 3 }
   0xd   : > { %s1894_s9 = smov [#allocation8]   ;;  %s1895_s12 = smov [#allocation11]  }
   0xe   : > { %p1978_p3 = pnand %p1261_p0, %p209_p2  ;;  %s243_s10 = sshll.u32 %s1894_s9, 4  ;;  %s1985_s10 = int_to_ptr.vmem [resolvable:$true] %s243_s10 }
   0xf   : > { %s267_s13 = sshll.u32 %s1895_s12, 4  ;;  %s2314_s1 = sld [smem:[#allocation20_spill]]  ;;  %s1993_s13 = int_to_ptr.vmem [resolvable:$true] %s267_s13 }
  0x10   : > { %s2312_s8 = scalar_select %p1978_p3, 1, 0 }
  0x11   : > { %p1427_p5 = pneg %p1978_p3 }
  0x13   : > { %p1989_p6 = pnand %p1427_p5, %p2308_p1 }
  0x15   : > { %s1615_s16 = scalar_lea.hbm %s2314_s1, 16  ;;  %p2003_p8 = pneg %p1989_p6 }
  0x16   : > { %p1616_p7 = scmp.ne.s32.totalorder %s2314_s1, %s1615_s16  ;;  %p1622_p11 = scmp.lt.u32.totalorder %s1615_s16, %s2314_s1 }
  0x18   : > { %p1618_p9 = pnand %p2003_p8, %p1616_p7 }
  0x1a   : > { %p1619_p10 = pneg %p1618_p9 }
  0x1c   : > { %p1624_p12 = pnand %p1622_p11, %p1619_p10 }
  0x1e   : > { %1627 = shalt.err (!%p1624_p12)
}
  0x1f   : > { %s1628_s22 = scalar_lea.vmem %s1976_s29, 16  ;;  %s1635_s23 = scalar_lea.vmem %s1976_s29, 32 }
  0x20   : > { %p1629_p13 = scmp.ne.s32.totalorder %s1976_s29, %s1628_s22  ;;  %p1636_p5 = scmp.lt.s32.totalorder %s1976_s29, %s1976_s29 }
  0x21   : > { %p1637_p7 = scmp.lt.s32.totalorder %s1635_s23, %s1628_s22 }
  0x22   : > { %p1631_p0 = pnand %p1629_p13, %p2003_p8 }
  0x23   : > { %p1638_p9 = por %p1637_p7, %p1636_p5 }
  0x24   : > { %p1632_p2 = pneg %p1631_p0 }
  0x26   : > { %p1639_p4 = pnand %p1638_p9, %p1632_p2 }
  0x28   : > { %1642 = shalt.err (!%p1639_p4)
}
  0x29   : > { %1430 = dma.hbm_to_vmem [thread:$0]  (!%p1989_p6), %s2314_s1, 16, %s1976_s29, [#allocation6]  }
  0x2a   : > { %s1643_s15 = scalar_lea.hbm %s2303_s3, 4096 }
  0x2b   : > { %p1644_p10 = scmp.ne.s32.totalorder %s2303_s3, %s1643_s15  ;;  %p1650_p4 = scmp.lt.u32.totalorder %s1643_s15, %s2303_s3 }
  0x2d   : > { %p1646_p11 = pnand %p1644_p10, %p2003_p8 }
  0x2f   : > { %p1647_p12 = pneg %p1646_p11 }
  0x31   : > { %p1652_p13 = pnand %p1650_p4, %p1647_p12 }
  0x33   : > { %1655 = shalt.err (!%p1652_p13)
}
  0x34   : > { %s1656_s29 = scalar_lea.vmem %s1985_s10, 4096  ;;  %p1664_p7 = scmp.lt.s32.totalorder %s1985_s10, %s1985_s10 }
  0x35   : > { %p1657_p0 = scmp.ne.s32.totalorder %s1985_s10, %s1656_s29  ;;  %p1665_p9 = scmp.lt.s32.totalorder %s1656_s29, %s1656_s29 }
  0x37   : > { %p1659_p2 = pnand %p1657_p0, %p2003_p8  ;;  %p1666_p10 = por %p1665_p9, %p1664_p7 }
  0x39   : > { %p1660_p5 = pneg %p1659_p2 }
  0x3b   : > { %p1667_p11 = pnand %p1666_p10, %p1660_p5 }
  0x3d   : > { %1670 = shalt.err (!%p1667_p11)
}
  0x3e   : > { %s1896_s21 = smov 256   ;;  %s1897_s22 = smov 16  }
  0x3f   : > { %1436 = dma.hbm_to_vmem [thread:$0]  (!%p1989_p6), %s2303_s3, 4096, %s1985_s10, [#allocation9], %s1896_s21, %s1896_s21, %s1897_s22  }
  0x40   : > { %s1671_s14 = scalar_lea.hbm %s2305_s5, 4096 }
  0x41   : > { %p1672_p12 = scmp.ne.s32.totalorder %s2305_s5, %s1671_s14  ;;  %p1678_p0 = scmp.lt.u32.totalorder %s1671_s14, %s2305_s5 }
  0x43   : > { %p1674_p4 = pnand %p1672_p12, %p2003_p8 }
  0x45   : > { %p1675_p13 = pneg %p1674_p4 }
  0x47   : > { %p1680_p2 = pnand %p1678_p0, %p1675_p13 }
  0x49   : > { %1683 = shalt.err (!%p1680_p2)
}
  0x4a   : > { %s1684_s10 = scalar_lea.vmem %s1993_s13, 4096  ;;  %p1692_p10 = scmp.lt.s32.totalorder %s1993_s13, %s1993_s13 }
  0x4b   : > { %p1685_p5 = scmp.ne.s32.totalorder %s1993_s13, %s1684_s10  ;;  %p1693_p11 = scmp.lt.s32.totalorder %s1684_s10, %s1684_s10 }
  0x4d   : > { %p1687_p7 = pnand %p1685_p5, %p2003_p8  ;;  %p1694_p12 = por %p1693_p11, %p1692_p10 }
  0x4f   : > { %p1688_p9 = pneg %p1687_p7 }
  0x51   : > { %p1695_p4 = pnand %p1694_p12, %p1688_p9 }
  0x53   : > { %1698 = shalt.err (!%p1695_p4)
}
  0x54   : > { %s1898_s20 = smov 64   ;;  %s1899_s29 = smov 4  }
  0x55   : > { %1442 = dma.hbm_to_vmem [thread:$0]  (!%p1989_p6), %s2305_s5, 4096, %s1993_s13, [#allocation12], %s1898_s20, %s1898_s20, %s1899_s29  }
  0x56   : > { %s1900_s23 = smov [#allocation7]   ;;  %s1901_s9 = smov [#allocation10]  }
  0x57   : > { %s233_s28 = sshll.u32 %s1900_s23, 4  ;;  %s257_s12 = sshll.u32 %s1901_s9, 4  ;;  %s234_s28 = int_to_ptr.vmem [resolvable:$true] %s233_s28  ;;  %s258_s12 = int_to_ptr.vmem [resolvable:$true] %s257_s12 }
  0x58   : > { %s1699_s16 = scalar_lea.hbm %s2302_s2, 16 }
  0x59   : > { %p1700_p13 = scmp.ne.s32.totalorder %s2302_s2, %s1699_s16  ;;  %p1706_p5 = scmp.lt.u32.totalorder %s1699_s16, %s2302_s2 }
  0x5b   : > { %p1702_p0 = pnand %p1700_p13, %p2003_p8 }
  0x5d   : > { %p1703_p2 = pneg %p1702_p0 }
  0x5f   : > { %p1708_p7 = pnand %p1706_p5, %p1703_p2 }
  0x61   : > { %1711 = shalt.err (!%p1708_p7)
}
  0x62   : > { %s1712_s13 = scalar_lea.vmem %s234_s28, 16  ;;  %s1719_s20 = scalar_lea.vmem %s234_s28, 32 }
  0x63   : > { %p1713_p9 = scmp.ne.s32.totalorder %s234_s28, %s1712_s13  ;;  %p1720_p12 = scmp.lt.s32.totalorder %s234_s28, %s234_s28 }
  0x64   : > { %p1721_p4 = scmp.lt.s32.totalorder %s1719_s20, %s1712_s13 }
  0x65   : > { %p1715_p10 = pnand %p1713_p9, %p2003_p8 }
  0x66   : > { %p1722_p1 = por %p1721_p4, %p1720_p12 }
  0x67   : > { %p1716_p11 = pneg %p1715_p10 }
  0x69   : > { %p1723_p3 = pnand %p1722_p1, %p1716_p11 }
  0x6b   : > { %1726 = shalt.err (!%p1723_p3)
}
  0x6c   : > { %1433 = dma.hbm_to_vmem [thread:$0]  (!%p1989_p6), %s2302_s2, 16, %s234_s28, [#allocation6]  }
  0x6d   : > { %s1727_s23 = scalar_lea.hbm %s2304_s4, 64 }
  0x6e   : > { %p1728_p13 = scmp.ne.s32.totalorder %s2304_s4, %s1727_s23  ;;  %p1734_p3 = scmp.lt.u32.totalorder %s1727_s23, %s2304_s4 }
  0x70   : > { %p1730_p0 = pnand %p1728_p13, %p2003_p8 }
  0x72   : > { %p1731_p1 = pneg %p1730_p0 }
  0x74   : > { %p1736_p2 = pnand %p1734_p3, %p1731_p1 }
  0x76   : > { %1739 = shalt.err (!%p1736_p2)
}
  0x77   : > { %s1740_s17 = scalar_lea.vmem %s258_s12, 64  ;;  %p1748_p10 = scmp.lt.s32.totalorder %s258_s12, %s258_s12 }
  0x78   : > { %p1741_p5 = scmp.ne.s32.totalorder %s258_s12, %s1740_s17  ;;  %p1749_p11 = scmp.lt.s32.totalorder %s1740_s17, %s1740_s17 }
  0x7a   : > { %p1743_p7 = pnand %p1741_p5, %p2003_p8  ;;  %p1750_p12 = por %p1749_p11, %p1748_p10 }
  0x7c   : > { %p1744_p9 = pneg %p1743_p7 }
  0x7e   : > { %p1751_p4 = pnand %p1750_p12, %p1744_p9 }
  0x80   : > { %1754 = shalt.err (!%p1751_p4)
}
  0x81   : > { %1439 = dma.hbm_to_vmem [thread:$0]  (!%p1989_p6), %s2304_s4, 64, %s258_s12, [#allocation9]  }
  0x82   : > { %s1902_s10 = smov [#allocation13]   ;;  %s1755_s21 = scalar_lea.hbm %s2306_s6, 16 }
  0x83   : > { %s281_s13 = sshll.u32 %s1902_s10, 4  ;;  %p1756_p13 = scmp.ne.s32.totalorder %s2306_s6, %s1755_s21  ;;  %s282_s13 = int_to_ptr.vmem [resolvable:$true] %s281_s13 }
  0x84   : > { %p1762_p3 = scmp.lt.u32.totalorder %s1755_s21, %s2306_s6 }
  0x85   : > { %p1758_p0 = pnand %p1756_p13, %p2003_p8 }
  0x87   : > { %p1759_p1 = pneg %p1758_p0 }
  0x89   : > { %p1764_p2 = pnand %p1762_p3, %p1759_p1 }
  0x8b   : > { %1767 = shalt.err (!%p1764_p2)
}
  0x8c   : > { %s1768_s12 = scalar_lea.vmem %s282_s13, 16  ;;  %s1775_s14 = scalar_lea.vmem %s282_s13, 32 }
  0x8d   : > { %p1769_p5 = scmp.ne.s32.totalorder %s282_s13, %s1768_s12  ;;  %p1776_p10 = scmp.lt.s32.totalorder %s282_s13, %s282_s13 }
  0x8e   : > { %p1777_p11 = scmp.lt.s32.totalorder %s1775_s14, %s1768_s12 }
  0x8f   : > { %p1771_p7 = pnand %p1769_p5, %p2003_p8 }
  0x90   : > { %p1778_p12 = por %p1777_p11, %p1776_p10 }
  0x91   : > { %p1772_p9 = pneg %p1771_p7 }
  0x93   : > { %p1779_p4 = pnand %p1778_p12, %p1772_p9 }
  0x95   : > { %1782 = shalt.err (!%p1779_p4)
}
  0x96   : > { %1445 = dma.hbm_to_vmem [thread:$0]  (!%p1989_p6), %s2306_s6, 16, %s282_s13, [#allocation12]  }
  0x97   : > { %s1260_s19 = sadd.s32 4294967294, %s1891_s27   ;;  %s2127_s11 = sadd.s32 1, %s1891_s27  }
  0x98   : > { %s30_s17 = ssub.s32 %s1891_s27, %s2127_s11  ;;  %s33_s28 = sadd.s32 1, %s1887_s26 }
  0x99   : > { %p31_p8 = scmp.eq.s32.totalorder %s30_s17, 0  ;;  %p40_p13 = scmp.ne.s32.totalorder %s1887_s26, %s1883_s25 }
  0x9a   : > { %p41_p0 = scmp.eq.s32.totalorder %s1891_s27, 0  ;;  %p46_p1 = scmp.ne.s32.totalorder %s1883_s25, %s1879_s24 }
  0x9b   : > { %s2138_s18 = scalar_select %p31_p8, %s1887_s26, %s33_s28  }
  0x9c   : > { %p2140_p3 = por %p41_p0, %p40_p13  ;;  %p2317_p2 = scmp.eq.s32.totalorder %s1971_s30, 0 }
  0x9d   : > { %p196_p5 = scmp.eq.s32.totalorder %s1971_s30, 1  ;;  %p202_p7 = scmp.eq.s32.totalorder %s1260_s19, 1 }
  0x9e   : > { %p2146_p6 = por %p2317_p2, %p46_p1  ;;  %p1460_p9 = scmp.lt.s32.totalorder %s1891_s27, 2 }
  0x9f   : > { %s292_s20 = sand.u32 1, %s1887_s26   ;;  %p2153_p10 = por %p196_p5, %p40_p13 }
  0xa0   : > { %p2157_p11 = por %p202_p7, %p46_p1  ;;  %s1269_s1 = sshll.u32 %s292_s20, 4 }
  0xa1   : > { %s2319_s29 = scalar_select %p2153_p10, 1, 0 }
  0xa2   : > { %s2320_s21 = scalar_select %p2157_p11, 1, 0 }
  0xa3   : > { %s1353_s22 = sshll.u32 %s1891_s27, 8  ;;  %s296_s14 = scalar_lea.vmem [#allocation2], %s1269_s1 }
  0xa4   : > { %s2165_s12 = scalar_lea.hbm %s2300_s0, %s1353_s22  ;;  %s303_s15 = sshll.u32 %s296_s14, 4  ;;  %s2167_s15 = int_to_ptr.vmem [resolvable:$true] %s303_s15 }
  0xa5   : > { %p2171_p12 = pnand %p1460_p9, %p2140_p3  ;;  %s2175_s19 = scalar_lea.sflag [#allocation3], %s292_s20 }
  0xa6   : > { %s1783_s17 = scalar_lea.hbm %s2165_s12, 256  ;;  %s1788_s10 = scalar_lea.hbm %s2300_s0, 512 }
  0xa7   : > { %p1784_p4 = scmp.ne.s32.totalorder %s2165_s12, %s1783_s17  ;;  %p1785_p8 = pneg %p2171_p12 }
  0xa8   : > { %p1789_p1 = scmp.lt.u32.totalorder %s2165_s12, %s2300_s0  ;;  %p1790_p3 = scmp.lt.u32.totalorder %s1788_s10, %s1783_s17 }
  0xa9   : > { %p1786_p13 = pnand %p1785_p8, %p1784_p4  ;;  %p1792_p5 = scmp.lt.u32.totalorder %s1783_s17, %s2165_s12 }
  0xaa   : > { %p1791_p2 = por %p1790_p3, %p1789_p1 }
  0xab   : > { %p1787_p0 = pneg %p1786_p13 }
  0xac   : > { %p1793_p7 = por %p1792_p5, %p1791_p2 }
  0xae   : > { %p1794_p9 = pnand %p1793_p7, %p1787_p0 }
  0xb0   : > { %1797 = shalt.err (!%p1794_p9)
}
  0xb1   : > { %s1798_s20 = scalar_lea.vmem %s2167_s15, 256  ;;  %s1903_s9 = smov [#allocation2]  }
  0xb2   : > { %p1799_p4 = scmp.ne.s32.totalorder %s2167_s15, %s1798_s20  ;;  %s1803_s14 = sshll.u32 %s1903_s9, 4  ;;  %s1804_s14 = int_to_ptr.vmem [resolvable:$false] %s1803_s14 }
  0xb3   : > { %s1805_s28 = scalar_lea.vmem %s1804_s14, 512  ;;  %p1806_p10 = scmp.lt.s32.totalorder %s2167_s15, %s1804_s14 }
  0xb4   : > { %p1801_p13 = pnand %p1799_p4, %p1785_p8  ;;  %p1807_p1 = scmp.lt.s32.totalorder %s1805_s28, %s1798_s20 }
  0xb6   : > { %p1802_p11 = pneg %p1801_p13  ;;  %p1808_p3 = por %p1807_p1, %p1806_p10 }
  0xb8   : > { %p1809_p2 = pnand %p1808_p3, %p1802_p11 }
  0xba   : > { %1812 = shalt.err (!%p1809_p2)
}
  0xbb   : > { %s1904_s17 = smov 128   ;;  %s1905_s1 = smov 8  }
  0xbc   : > { %1449 = dma.hbm_to_vmem [thread:$0]  (!%p2171_p12), %s2165_s12, 256, %s2167_s15, %s2175_s19, %s1904_s17, %s1904_s17, %s1905_s1  }
  0xbd   : > { %p2322_p8 = scmp.ne.s32.totalorder %s2312_s8, 0 }
  0xbe   : > { %s2206_s10 = sand.u32 (!%p2322_p8), 1, %s1883_s25  }
  0xbf   : > { %315 = sbr.rel (%p2322_p8) target bundleno = 1005 (0x3ed), region = 48  ;;  %s1273_s22 = sshll.u32 (!%p2322_p8), %s2206_s10, 4 }
  0xc0   : > { %s318_s23 = scalar_lea.sflag (!%p2322_p8), [#allocation3], %s2206_s10  ;;  %s321_s20 = scalar_lea.vmem (!%p2322_p8), [#allocation2], %s1273_s22 }
  0xc6   : > { %1858 = dma.done.wait (%p2146_p6), %s318_s23, 256  }
  0xc7   : > { %1860 = vsyncadd (%p2146_p6), %s318_s23, 4294967040  ;;  %p2323_p10 = scmp.eq.s32.totalorder %s1971_s30, 0 }
  0xc9   : > { %1862 = dma.done.wait (%p2323_p10), [#allocation6], 32   ;;  %p2324_p11 = pmov %p2323_p10 }
  0xca   : > { %p2325_p12 = pmov %p2323_p10 }
  0xcb   : > { %1864 = vsyncadd (%p2324_p11), [#allocation6], 4294967264 }
  0xcc   : > { %1866 = dma.done.wait (%p2325_p12), [#allocation9], 4160   ;;  %p2326_p0 = pmov %p2323_p10 }
  0xce   : > { %1868 = vsyncadd (%p2326_p0), [#allocation9], 4294963136  ;;  %p2327_p5 = pmov %p2326_p0 }
  0xcf   : > { %p2328_p7 = pmov %p2326_p0 }
  0xd0   : > { %1870 = dma.done.wait (%p2327_p5), [#allocation12], 4112  }
  0xd1   : > { %1872 = vsyncadd (%p2328_p7), [#allocation12], 4294963184  ;;  %v2228_v0 = vld [vmem:[%s321_s20] sm:$0xff]  ;;  %v2230_v1 = vld [vmem:[%s321_s20 + $0x8] sm:$0xff]  ;;  %v1906_v36 = vmov 0   ;;  %s375_s8 = scalar_lea.vmem [#allocation14], %s1273_s22 }
  0xd2   : > { %383 = vadd.xlane.f32.xlu0 %v2228_v0  ;;  %v1515_v2 = vld [vmem:[#allocation8 + $0x4] ss:$16 sps:$4 sm:$0xff]   ;;  %v1517_v3 = vld [vmem:[#allocation8 + $0xc] ss:$16 sps:$4 sm:$0xff]   ;;  %v1519_v4 = vld [vmem:[#allocation8] ss:$16 sps:$4 sm:$0xff]   ;;  %669 = vmatprep.mubr.bf16.mxu0 %v1906_v36 }
  0xd3   : > { %v1520_v5 = vld [vmem:[#allocation8 + $0x8] ss:$16 sps:$4 sm:$0xff]   ;;  %v1521_v6 = vld [vmem:[#allocation8 + $0x24] ss:$16 sps:$4 sm:$0xff]   ;;  %v1523_v7 = vld [vmem:[#allocation8 + $0x2c] ss:$16 sps:$4 sm:$0xff]   ;;  %637 = vmatprep.subr.bf16.mxu0 %v1515_v2  ;;  %680 = vmatprep.subr.bf16.mxu1 %v1517_v3 }
  0xd4   : > { %638 = vmatpush1.bf16.msra.mxu0 %v1519_v4  ;;  %681 = vmatpush1.bf16.msra.mxu1 %v1520_v5  ;;  %v1525_v16 = vld [vmem:[#allocation8 + $0x20] ss:$16 sps:$4 sm:$0xff]   ;;  %v1526_v17 = vld [vmem:[#allocation8 + $0x28] ss:$16 sps:$4 sm:$0xff]   ;;  %v1527_v18 = vld [vmem:[#allocation8 + $0x44] ss:$16 sps:$4 sm:$0xff]  }
  0xd5   : > { %639 = vmatprep.subr.bf16.mxu0 %v1521_v6  ;;  %682 = vmatprep.subr.bf16.mxu1 %v1523_v7  ;;  %v1529_v19 = vld [vmem:[#allocation8 + $0x4c] ss:$16 sps:$4 sm:$0xff]   ;;  %v1531_v20 = vld [vmem:[#allocation8 + $0x40] ss:$16 sps:$4 sm:$0xff]   ;;  %v1532_v21 = vld [vmem:[#allocation8 + $0x48] ss:$16 sps:$4 sm:$0xff]  }
  0xd6   : > { %385 = vadd.xlane.f32.xlu0 %v2230_v1  ;;  %v1533_v22 = vld [vmem:[#allocation8 + $0x64] ss:$16 sps:$4 sm:$0xff]   ;;  %v1535_v23 = vld [vmem:[#allocation8 + $0x6c] ss:$16 sps:$4 sm:$0xff]   ;;  %v1537_v24 = vld [vmem:[#allocation8 + $0x60] ss:$16 sps:$4 sm:$0xff]   ;;  %712 = vmatprep.mubr.bf16.mxu1 %v1906_v36 }
  0xd7   : > { %v1538_v25 = vld [vmem:[#allocation8 + $0x68] ss:$16 sps:$4 sm:$0xff]   ;;  %v1539_v26 = vld [vmem:[#allocation8 + $0x84] ss:$16 sps:$4 sm:$0xff]   ;;  %v1541_v27 = vld [vmem:[#allocation8 + $0x8c] ss:$16 sps:$4 sm:$0xff]  }
  0xd8   : > { %640 = vmatpush1.bf16.msra.mxu0 %v1525_v16  ;;  %683 = vmatpush1.bf16.msra.mxu1 %v1526_v17  ;;  %v1543_v28 = vld [vmem:[#allocation8 + $0x80] ss:$16 sps:$4 sm:$0xff]   ;;  %v1544_v29 = vld [vmem:[#allocation8 + $0x88] ss:$16 sps:$4 sm:$0xff]   ;;  %v1545_v30 = vld [vmem:[#allocation8 + $0xa4] ss:$16 sps:$4 sm:$0xff]  }
  0xd9   : > { %641 = vmatprep.subr.bf16.mxu0 %v1527_v18  ;;  %684 = vmatprep.subr.bf16.mxu1 %v1529_v19  ;;  %v1547_v31 = vld [vmem:[#allocation8 + $0xac] ss:$16 sps:$4 sm:$0xff]   ;;  %v1549_v32 = vld [vmem:[#allocation8 + $0xa0] ss:$16 sps:$4 sm:$0xff]   ;;  %v1550_v33 = vld [vmem:[#allocation8 + $0xa8] ss:$16 sps:$4 sm:$0xff]  }
  0xda   : > { %v1551_v34 = vld [vmem:[#allocation8 + $0xc4] ss:$16 sps:$4 sm:$0xff]   ;;  %v1553_v35 = vld [vmem:[#allocation8 + $0xcc] ss:$16 sps:$4 sm:$0xff]   ;;  %v1555_v37 = vld [vmem:[#allocation8 + $0xc0] ss:$16 sps:$4 sm:$0xff]  }
  0xdb   : > { %v1556_v38 = vld [vmem:[#allocation8 + $0xc8] ss:$16 sps:$4 sm:$0xff]   ;;  %v1557_v39 = vld [vmem:[#allocation8 + $0xe4] ss:$16 sps:$4 sm:$0xff]   ;;  %v1559_v40 = vld [vmem:[#allocation8 + $0xec] ss:$16 sps:$4 sm:$0xff]  }
  0xdc   : > { %642 = vmatpush1.bf16.msra.mxu0 %v1531_v20  ;;  %685 = vmatpush1.bf16.msra.mxu1 %v1532_v21  ;;  %v1561_v41 = vld [vmem:[#allocation8 + $0xe0] ss:$16 sps:$4 sm:$0xff]   ;;  %v1562_v42 = vld [vmem:[#allocation8 + $0xe8] ss:$16 sps:$4 sm:$0xff]   ;;  %v1281_v53 = vld [vmem:[#allocation5] ss:$0 sm:$0xff] }
  0xdd   : > { %643 = vmatprep.subr.bf16.mxu0 %v1533_v22  ;;  %686 = vmatprep.subr.bf16.mxu1 %v1535_v23  ;;  %v1563_v43 = vld [vmem:[#allocation11 + $0x40] sm:$0xff]   ;;  %v1282_v57 = vld [vmem:[#allocation7] ss:$0 sm:$0xff]  ;;  %v1567_v2 = vld [vmem:[#allocation11 + $0x48] sm:$0xff]   ;;  %s1130_s13 = sshll.u32 %s375_s8, 4  ;;  %s1354_s12 = sshll.u32 %s1971_s30, 8  ;;  %s2250_s13 = int_to_ptr.vmem [resolvable:$true] %s1130_s13 }
  0xde   : > { %v1564_v44 = vld [vmem:[#allocation11 + $0xc0] sm:$0xff]   ;;  %v1568_v3 = vld [vmem:[#allocation11 + $0xc8] sm:$0xff]   ;;  %v1571_v6 = vld [vmem:[#allocation11 + $0x50] sm:$0xff]   ;;  %s2255_s19 = scalar_lea.hbm %s2307_s7, %s1354_s12  ;;  %s1117_s9 = scalar_lea.sflag [#allocation4], %s2206_s10 }
  0xdf   : > { %v1565_v61 = vld [vmem:[#allocation11] sm:$0xff]   ;;  %v1569_v4 = vld [vmem:[#allocation11 + $0x8] sm:$0xff]   ;;  %v1572_v7 = vld [vmem:[#allocation11 + $0xd0] sm:$0xff]   ;;  %s1813_s14 = scalar_lea.vmem %s2250_s13, 256  ;;  %p2329_p9 = scmp.ne.s32.totalorder %s2319_s29, 0 }
  0xe0   : > { %644 = vmatpush1.bf16.msra.mxu0 %v1537_v24  ;;  %687 = vmatpush1.bf16.msra.mxu1 %v1538_v25  ;;  %v1566_v62 = vld [vmem:[#allocation11 + $0x80] sm:$0xff]   ;;  %v1570_v5 = vld [vmem:[#allocation11 + $0x88] sm:$0xff]   ;;  %v1587_v22 = vld [vmem:[#allocation11 + $0x70] sm:$0xff]   ;;  %p1814_p6 = scmp.ne.s32.totalorder %s2250_s13, %s1813_s14  ;;  %s1907_s30 = smov [#allocation14]  }
  0xe1   : > { %645 = vmatprep.subr.bf16.mxu0 %v1539_v26  ;;  %688 = vmatprep.subr.bf16.mxu1 %v1541_v27  ;;  %v1581_v16 = vld [vmem:[#allocation11 + $0x20] sm:$0xff]   ;;  %v1583_v18 = vld [vmem:[#allocation11 + $0x68] sm:$0xff]   ;;  %v1588_v23 = vld [vmem:[#allocation11 + $0xf0] sm:$0xff]   ;;  %s1817_s28 = sshll.u32 %s1907_s30, 4  ;;  %s1818_s28 = int_to_ptr.vmem [resolvable:$false] %s1817_s28 }
  0xe2   : > { %v1582_v17 = vld [vmem:[#allocation11 + $0xa0] sm:$0xff]   ;;  %v1584_v19 = vld [vmem:[#allocation11 + $0xe8] sm:$0xff]   ;;  %v1589_v24 = vld [vmem:[#allocation11 + $0x30] sm:$0xff]   ;;  %p1815_p4 = pnand %p1814_p6, %p2329_p9  ;;  %s1819_s17 = scalar_lea.vmem %s1818_s28, 512 }
  0xe3   : > { %v1585_v20 = vld [vmem:[#allocation11 + $0x28] sm:$0xff]   ;;  %v1590_v25 = vld [vmem:[#allocation11 + $0xb0] sm:$0xff]   ;;  %v1591_v26 = vld [vmem:[#allocation11 + $0x78] sm:$0xff]   ;;  %p1820_p1 = scmp.lt.s32.totalorder %s2250_s13, %s1818_s28  ;;  %p1821_p3 = scmp.lt.s32.totalorder %s1819_s17, %s1813_s14 }
  0xe4   : > { %646 = vmatpush1.bf16.msra.mxu0 %v1543_v28  ;;  %689 = vmatpush1.bf16.msra.mxu1 %v1544_v29  ;;  %v1586_v21 = vld [vmem:[#allocation11 + $0xa8] sm:$0xff]   ;;  %v1592_v27 = vld [vmem:[#allocation11 + $0xf8] sm:$0xff]   ;;  %p1816_p13 = pneg %p1815_p4 }
  0xe5   : > { %647 = vmatprep.subr.bf16.mxu0 %v1545_v30  ;;  %690 = vmatprep.subr.bf16.mxu1 %v1547_v31  ;;  %v1593_v28 = vld [vmem:[#allocation11 + $0x38] sm:$0xff]   ;;  %v457_v30 = vlaneseq  ;;  %p1822_p2 = por %p1821_p3, %p1820_p1 }
  0xe6   : > { %v1594_v29 = vld [vmem:[#allocation11 + $0xb8] sm:$0xff]  }
  0xe7   : > { %v458_v31 = vshrl.u32 %v457_v30, 7  ;;  %p1823_p8 = pnand %p1822_p2, %p1816_p13 }
  0xe8   : > { %648 = vmatpush1.bf16.msra.mxu0 %v1549_v32  ;;  %691 = vmatpush1.bf16.msra.mxu1 %v1550_v33 }
  0xe9   : > { %649 = vmatprep.subr.bf16.mxu0 %v1551_v34  ;;  %692 = vmatprep.subr.bf16.mxu1 %v1553_v35  ;;  %v459_v32 = vsub.s32 0, %v458_v31  ;;  %v467_v33 = vsub.s32 2, %v458_v31  ;;  %v455_v34 = vld [vmem:[#allocation10] sm:$0xf]  ;;  %v463_v35 = vsub.s32 1, %v458_v31  ;;  %v471_v36 = vsub.s32 3, %v458_v31 }
  0xec   : > { %650 = vmatpush1.bf16.msra.mxu0 %v1555_v37  ;;  %693 = vmatpush1.bf16.msra.mxu1 %v1556_v38  ;;  %v460_v37 = vrot.slane %v455_v34, %v459_v32  ;;  %v468_v38 = vrot.slane %v455_v34, %v467_v33 }
  0xed   : > { %651 = vmatprep.subr.bf16.mxu0 %v1557_v39  ;;  %694 = vmatprep.subr.bf16.mxu1 %v1559_v40  ;;  %v464_v39 = vrot.slane %v455_v34, %v463_v35  ;;  %v472_v40 = vrot.slane %v455_v34, %v471_v36 }
  0xf0   : > { %652 = vmatpush1.bf16.msra.mxu0 %v1561_v41  ;;  %695 = vmatpush1.bf16.msra.mxu1 %v1562_v42 }
  0xf1   : > { %1355 = vmatprep.subr.bf16.mxu0 %v1563_v43  ;;  %1377 = vmatprep.subr.bf16.mxu1 %v1564_v44 }
 0x15f   : > { %v384_v8 = vpop.xlane.xlu0 %383 }
 0x160   : > { %v388_v9 = vmul.f32 0.0078125, %v384_v8  ;;  %v1573_v8 = vld [vmem:[#allocation11 + $0x10] sm:$0xff]  }
 0x162   : > { %v2235_v10 = vsub.f32 %v2228_v0, %v388_v9  ;;  %v1574_v9 = vld [vmem:[#allocation11 + $0x90] sm:$0xff]  }
 0x163   : > { %v386_v11 = vpop.xlane.xlu0 %385 }
 0x164   : > { %v389_v12 = vmul.f32 0.0078125, %v386_v11  ;;  %v392_v13 = vmul.f32 %v2235_v10, %v2235_v10  ;;  %v1576_v11 = vld [vmem:[#allocation11 + $0xd8] sm:$0xff]  }
 0x166   : > { %v2240_v14 = vsub.f32 %v2230_v1, %v389_v12  ;;  %394 = vadd.xlane.f32.xlu1 %v392_v13  ;;  %v1577_v12 = vld [vmem:[#allocation11 + $0x18] sm:$0xff]  }
 0x167   : > { %v1578_v13 = vld [vmem:[#allocation11 + $0x98] sm:$0xff]  }
 0x168   : > { %v393_v15 = vmul.f32 %v2240_v14, %v2240_v14 }
 0x16a   : > { %396 = vadd.xlane.f32.xlu1 %v393_v15  ;;  %v1580_v15 = vld [vmem:[#allocation11 + $0xe0] sm:$0xff]  }
 0x1f3   : > { %v395_v45 = vpop.xlane.xlu1 %394 }
 0x1f4   : > { %v398_v46 = vmul.f32 0.0078125, %v395_v45 }
 0x1f6   : > { %v400_v47 = vadd.f32 1e-05, %v398_v46 }
 0x1f7   : > { %v397_v48 = vpop.xlane.xlu1 %396 }
 0x1f8   : > { %1595 = vrsqrt.f32 %v400_v47  ;;  %v399_v49 = vmul.f32 0.0078125, %v397_v48 }
 0x1fa   : > { %v401_v50 = vadd.f32 1e-05, %v399_v49 }
 0x1fc   : > { %1597 = vrsqrt.f32 %v401_v50 }
 0x202   : > { %v1596_v51 = vpop.eup %1595 }
 0x203   : > { %v404_v52 = vmul.f32 %v1596_v51, %v2235_v10  ;;  %v1575_v10 = vld [vmem:[#allocation11 + $0x58] sm:$0xff]  }
 0x205   : > { %v412_v56 = vmul.f32 %v1281_v53, %v404_v52 }
 0x206   : > { %v1598_v54 = vpop.eup %1597 }
 0x207   : > { %v405_v55 = vmul.f32 %v1598_v54, %v2240_v14  ;;  %v420_v59 = vadd.f32 %v1282_v57, %v412_v56  ;;  %v1579_v14 = vld [vmem:[#allocation11 + $0x60] sm:$0xff]  }
 0x209   : > { %v413_v58 = vmul.f32 %v1281_v53, %v405_v55 }
 0x20b   : > { %v421_v60 = vadd.f32 %v1282_v57, %v413_v58 }
 0x20d   : > { %v422_v63 = vpack.c.bf16 %v421_v60, %v420_v59 }
 0x20f   : > { %670 = vmatmul.mubr.bf16.vlgmr.msra.gmra.mrb[0].mxu0 %v422_v63  ;;  %713 = vmatmul.mubr.bf16.vlgmr.msra.gmra.mrb[0].mxu1 %v422_v63 }
 0x210   : > { %1356 = vmatpush3.bf16.msra.mxu0 %v1565_v61  ;;  %1378 = vmatpush3.bf16.msra.mxu1 %v1566_v62 }
 0x211   : > { %1357 = vmatprep.subr.bf16.mxu0 %v1567_v2  ;;  %1379 = vmatprep.subr.bf16.mxu1 %v1568_v3 }
 0x214   : > { %1358 = vmatpush3.bf16.msra.mxu0 %v1569_v4  ;;  %1380 = vmatpush3.bf16.msra.mxu1 %v1570_v5 }
 0x215   : > { %1359 = vmatprep.subr.bf16.mxu0 %v1571_v6  ;;  %1381 = vmatprep.subr.bf16.mxu1 %v1572_v7 }
 0x218   : > { %1360 = vmatpush3.bf16.msra.mxu0 %v1573_v8  ;;  %1382 = vmatpush3.bf16.msra.mxu1 %v1574_v9 }
 0x219   : > { %1361 = vmatprep.subr.bf16.mxu0 %v1575_v10  ;;  %1383 = vmatprep.subr.bf16.mxu1 %v1576_v11 }
 0x21c   : > { %1362 = vmatpush3.bf16.msra.mxu0 %v1577_v12  ;;  %1384 = vmatpush3.bf16.msra.mxu1 %v1578_v13 }
 0x21d   : > { %1363 = vmatprep.subr.bf16.mxu0 %v1579_v14  ;;  %1385 = vmatprep.subr.bf16.mxu1 %v1580_v15 }
 0x220   : > { %1364 = vmatpush3.bf16.msra.mxu0 %v1581_v16  ;;  %1386 = vmatpush3.bf16.msra.mxu1 %v1582_v17 }
 0x221   : > { %1365 = vmatprep.subr.bf16.mxu0 %v1583_v18  ;;  %1387 = vmatprep.subr.bf16.mxu1 %v1584_v19 }
 0x224   : > { %1366 = vmatpush3.bf16.msra.mxu0 %v1585_v20  ;;  %1388 = vmatpush3.bf16.msra.mxu1 %v1586_v21 }
 0x225   : > { %1367 = vmatprep.subr.bf16.mxu0 %v1587_v22  ;;  %1389 = vmatprep.subr.bf16.mxu1 %v1588_v23 }
 0x228   : > { %1368 = vmatpush3.bf16.msra.mxu0 %v1589_v24  ;;  %1390 = vmatpush3.bf16.msra.mxu1 %v1590_v25 }
 0x229   : > { %1369 = vmatprep.subr.bf16.mxu0 %v1591_v26  ;;  %1391 = vmatprep.subr.bf16.mxu1 %v1592_v27 }
 0x22c   : > { %1370 = vmatpush3.bf16.msra.mxu0 %v1593_v28  ;;  %1392 = vmatpush3.bf16.msra.mxu1 %v1594_v29 }
 0x2e2   : > { %v671_v41 = vpop.f32.mrb[0].mxu0  ;;  %v714_v42 = vpop.f32.mrb[0].mxu1 }
 0x2e3   : > { %v672_v43 = vadd.f32 %v671_v41, %v460_v37  ;;  %v715_v44 = vadd.f32 %v714_v42, %v468_v38  ;;  %v673_v45 = vpop.f32.mrb[1].mxu0  ;;  %v716_v46 = vpop.f32.mrb[1].mxu1  ;;  %v1315_v41 = vld [vmem:[#allocation13] ss:$0 sm:$0xff] }
 0x2e4   : > { %v674_v47 = vadd.f32 %v673_v45, %v464_v39  ;;  %v717_v48 = vadd.f32 %v716_v46, %v472_v40  ;;  %v675_v49 = vpop.f32.mrb[2].mxu0  ;;  %v718_v50 = vpop.f32.mrb[2].mxu1 }
 0x2e5   : > { %v731_v51 = vmul.f32 0.70710677, %v672_v43  ;;  %v733_v52 = vmul.f32 0.70710677, %v715_v44  ;;  %v676_v55 = vadd.f32 %v675_v49, %v460_v37  ;;  %v719_v56 = vadd.f32 %v718_v50, %v468_v38  ;;  %v677_v57 = vpop.f32.mrb[3].mxu0  ;;  %v720_v58 = vpop.f32.mrb[3].mxu1 }
 0x2e6   : > { %v732_v53 = vmul.f32 0.70710677, %v674_v47  ;;  %v734_v54 = vmul.f32 0.70710677, %v717_v48  ;;  %v678_v59 = vadd.f32 %v677_v57, %v464_v39  ;;  %v721_v60 = vadd.f32 %v720_v58, %v472_v40 }
 0x2e7   : > { %1599 = verf.f32 %v731_v51  ;;  %v735_v61 = vmul.f32 0.70710677, %v676_v55  ;;  %v737_v62 = vmul.f32 0.70710677, %v719_v56  ;;  %v723_v9 = vmul.f32 0.5, %v672_v43 }
 0x2e8   : > { %1601 = verf.f32 %v733_v52  ;;  %v736_v63 = vmul.f32 0.70710677, %v678_v59  ;;  %v738_v2 = vmul.f32 0.70710677, %v721_v60  ;;  %v725_v10 = vmul.f32 0.5, %v715_v44 }
 0x2e9   : > { %1603 = verf.f32 %v732_v53  ;;  %v724_v13 = vmul.f32 0.5, %v674_v47  ;;  %v727_v15 = vmul.f32 0.5, %v676_v55  ;;  %v726_v18 = vmul.f32 0.5, %v717_v48 }
 0x2ea   : > { %1605 = verf.f32 %v734_v54  ;;  %v729_v20 = vmul.f32 0.5, %v719_v56  ;;  %v728_v25 = vmul.f32 0.5, %v678_v59  ;;  %v730_v29 = vmul.f32 0.5, %v721_v60 }
 0x2eb   : > { %1607 = verf.f32 %v735_v61 }
 0x2ec   : > { %1609 = verf.f32 %v737_v62 }
 0x2ed   : > { %1611 = verf.f32 %v736_v63 }
 0x2ee   : > { %1613 = verf.f32 %v738_v2 }
 0x2f1   : > { %v1600_v3 = vpop.eup %1599 }
 0x2f2   : > { %v1602_v4 = vpop.eup %1601  ;;  %v747_v7 = vadd.f32 1.0, %v1600_v3 }
 0x2f3   : > { %v1604_v5 = vpop.eup %1603  ;;  %v749_v11 = vadd.f32 1.0, %v1602_v4 }
 0x2f4   : > { %v1606_v6 = vpop.eup %1605  ;;  %v748_v14 = vadd.f32 1.0, %v1604_v5  ;;  %v755_v23 = vmul.f32 %v747_v7, %v723_v9 }
 0x2f5   : > { %v1608_v8 = vpop.eup %1607  ;;  %v750_v19 = vadd.f32 1.0, %v1606_v6  ;;  %v757_v27 = vmul.f32 %v749_v11, %v725_v10 }
 0x2f6   : > { %v1610_v12 = vpop.eup %1609  ;;  %v751_v16 = vadd.f32 1.0, %v1608_v8  ;;  %v756_v31 = vmul.f32 %v748_v14, %v724_v13 }
 0x2f7   : > { %v1612_v17 = vpop.eup %1611  ;;  %v753_v21 = vadd.f32 1.0, %v1610_v12  ;;  %v758_v34 = vmul.f32 %v750_v19, %v726_v18 }
 0x2f8   : > { %v1614_v22 = vpop.eup %1613  ;;  %v759_v24 = vmul.f32 %v751_v16, %v727_v15  ;;  %v752_v26 = vadd.f32 1.0, %v1612_v17 }
 0x2f9   : > { %v761_v28 = vmul.f32 %v753_v21, %v729_v20  ;;  %v754_v30 = vadd.f32 1.0, %v1614_v22 }
 0x2fa   : > { %v763_v32 = vpack.c.bf16 %v759_v24, %v755_v23  ;;  %v760_v33 = vmul.f32 %v752_v26, %v728_v25 }
 0x2fb   : > { %v765_v35 = vpack.c.bf16 %v761_v28, %v757_v27  ;;  %v762_v36 = vmul.f32 %v754_v30, %v730_v29 }
 0x2fc   : > { %v764_v37 = vpack.c.bf16 %v760_v33, %v756_v31 }
 0x2fd   : > { %v766_v38 = vpack.c.bf16 %v762_v36, %v758_v34 }
 0x2fe   : > { %1062 = vmatprep.mubr.bf16.mxu0 %v764_v37 }
 0x2ff   : > { %1103 = vmatprep.mubr.bf16.mxu1 %v766_v38  ;;  %1063 = vmatmul.mubr.bf16.vlgmr.msra.gmra.mrb[4].mxu0 %v763_v32 }
 0x300   : > { %1104 = vmatmul.mubr.bf16.vlgmr.msra.gmra.mrb[4].mxu1 %v765_v35 }
 0x3d2   : > { %v1371_v39 = vpop.f32.mrb[4].mxu0 }
 0x3d3   : > { %v1393_v40 = vpop.f32.mrb[4].mxu1  ;;  %v1372_v42 = vpop.f32.mrb[5].mxu0 }
 0x3d4   : > { %v1373_v43 = vadd.f32 %v1372_v42, %v1371_v39  ;;  %v1394_v44 = vpop.f32.mrb[5].mxu1  ;;  %v1374_v45 = vpop.f32.mrb[6].mxu0 }
 0x3d5   : > { %v1395_v46 = vadd.f32 %v1394_v44, %v1393_v40  ;;  %v1396_v47 = vpop.f32.mrb[6].mxu1  ;;  %v1375_v48 = vpop.f32.mrb[7].mxu0 }
 0x3d6   : > { %v1065_v49 = vadd.f32 %v1373_v43, %v1315_v41  ;;  %v1376_v50 = vadd.f32 %v1375_v48, %v1374_v45  ;;  %v1397_v51 = vpop.f32.mrb[7].mxu1 }
 0x3d7   : > { %v1398_v52 = vadd.f32 %v1397_v51, %v1396_v47 }
 0x3d8   : > { %v1106_v53 = vadd.f32 %v1395_v46, %v1065_v49  ;;  %v1068_v54 = vadd.f32 %v1376_v50, %v1315_v41 }
 0x3da   : > { %v1112_v55 = vadd.f32 %v1106_v53, %v2228_v0  ;;  %v1109_v56 = vadd.f32 %v1398_v52, %v1068_v54 }
 0x3dc   : > { %1114 = vst [vmem:[%s375_s8] sm:$0xff] %v1112_v55  ;;  %v1113_v57 = vadd.f32 %v1109_v56, %v2230_v1 }
 0x3de   : > { %1115 = vst [vmem:[%s375_s8 + $0x8] sm:$0xff] %v1113_v57 }
 0x3df   : > { %1826 = shalt.err (!%p1823_p8)
}
 0x3e0   : > { %s1827_s1 = scalar_lea.hbm %s2255_s19, 256  ;;  %s1831_s20 = scalar_lea.hbm %s2307_s7, 512 }
 0x3e1   : > { %p1828_p10 = scmp.ne.s32.totalorder %s2255_s19, %s1827_s1  ;;  %p1832_p0 = scmp.lt.u32.totalorder %s2255_s19, %s2307_s7 }
 0x3e2   : > { %p1833_p5 = scmp.lt.u32.totalorder %s1831_s20, %s1827_s1  ;;  %p1835_p6 = scmp.lt.u32.totalorder %s1827_s1, %s2255_s19 }
 0x3e3   : > { %p1829_p11 = pnand %p1828_p10, %p2329_p9 }
 0x3e4   : > { %p1834_p7 = por %p1833_p5, %p1832_p0 }
 0x3e5   : > { %p1830_p12 = pneg %p1829_p11 }
 0x3e6   : > { %p1836_p4 = por %p1835_p6, %p1834_p7 }
 0x3e8   : > { %p1837_p13 = pnand %p1836_p4, %p1830_p12 }
 0x3ea   : > { %1840 = shalt.err (!%p1837_p13)
}
 0x3eb   : > { %s1908_s15 = smov 128   ;;  %s1909_s16 = smov 8  }
 0x3ec   : > { %1425 = dma.vmem_to_hbm [thread:$0]  (%p2329_p9), %s2250_s13, 256, %s2255_s19, %s1117_s9, %s1908_s15, %s1908_s15, %s1909_s16  }
 0x3ed PF: > { %s1145_s14 = sand.u32 1, %s1879_s24   ;;  %p2330_p1 = scmp.ne.s32.totalorder %s2320_s21, 0 }
 0x3ee   : > { %p2331_p3 = scmp.ge.s32.totalorder %s1891_s27, 2  ;;  %s1146_s30 = scalar_lea.sflag [#allocation4], %s1145_s14 }
 0x3f0   : > { %p1451_p2 = pnand %p2331_p3, %p2330_p1 }
 0x3f2   : > { %1874 = dma.done.wait (!%p1451_p2), %s1146_s30, 256  }
 0x3f3   : > { %1876 = vsyncadd (!%p1451_p2), %s1146_s30, 4294967040  ;;  %p23_p8 = scmp.ge.s32.totalorder %s2127_s11, 4   ;;  %s2332_s24 = smov %s1883_s25 }
 0x3f4   : > { %s2333_s25 = smov %s1887_s26  ;;  %s2334_s26 = smov %s2138_s18 }
 0x3f5   : > { %s2335_s27 = smov %s2127_s11  ;;  %25 = sbr.rel (!%p23_p8) target bundleno = 10 (0xa), region = 117 }
 0x3fc   :  { %1151 = vsyncpa [#allocation3], 1 }
 0x3fd   :  { %1153 = vsyncpa [#allocation3 + $0x1], 1 }
 0x3fe   :  { %1154 = vsyncpa [#allocation6], 1 }
 0x3ff   :  { %1155 = vsyncpa [#allocation9], 1 }
 0x400   :  { %1156 = vsyncpa [#allocation12], 1 }
 0x401   :  { %1157 = vsyncpa [#allocation4], 1 }
 0x402   :  { %1159 = vsyncpa [#allocation4 + $0x1], 1 }

</bundles_post_ra>
